<compile_context>
chip_gen: v7x
topology: tpu7x:2x2x1
jax: 0.10.0
libtpu: 0.0.40
codegen_flags: <defaults>
</compile_context>

<pallas_src>
import functools

import jax
import jax.numpy as jnp
from jax.experimental import pallas as pl
from jax.experimental.pallas import tpu as pltpu


# ----------------------------------------------------------------------------- helpers

def sampling_generator(N, reverse=False):
    samplings = [False, True] * (N // 2)
    if reverse:
        return list(reversed(samplings[:N]))
    return samplings[:N]


def pixel_shuffle_nhwc(x, r):
    """NHWC equivalent of torch.nn.PixelShuffle(r): channel index c*r*r + i*r + j
    goes to output channel c at spatial offset (i, j)."""
    B, H, W, C4 = x.shape
    C = C4 // (r * r)
    x = x.reshape(B, H, W, C, r, r)
    x = jnp.transpose(x, (0, 1, 4, 2, 5, 3))
    return x.reshape(B, H * r, W * r, C)


# ----------------------------------------------------------------------------- fused block kernel

_SUBPAD = 8   # sublane-aligned left halo offset inside the padded-image scratch


def _fused_block_kernel(*refs, H, W, C, K, pad, sub, R, groups, eps,
                        has_res, has_readout):
    """One MGMAConvSC block (+ optional residual input, + optional 1x1 readout), one batch
    element per grid step.  Output is in *packed* channel space (pre-pixel-shuffle)."""
    it = iter(refs)
    x_ref = next(it)
    res_ref = next(it) if has_res else None
    w_ref = next(it)          # (K*K*C, R*C) bf16, im2col-flattened HWIO weight
    b_ref = next(it)          # (1, R*C) f32
    gam_ref = next(it)        # (1, R*C) f32  (gamma repeated R times per channel)
    bet_ref = next(it)        # (1, R*C) f32
    rw_ref = next(it) if has_readout else None   # (C, C_out) bf16
    rb_ref = next(it) if has_readout else None   # (1, C_out) f32
    o_ref = next(it)
    xpad_ref = next(it)       # (H+2p, W+sub+p, C) f32 halo scratch
    col_ref = next(it)        # (H*W, K*K*C) f32 im2col scratch

    Cmid = R * C
    HW = H * W
    Hp = H + 2 * pad
    Wp = W + sub + pad

    # ---- load input (+ fused residual add), write into zero-padded halo scratch ----
    x = x_ref[0].astype(jnp.float32)                          # (H, W, C)
    if has_res:
        x = x + res_ref[0].astype(jnp.float32)                # hid + enc1 (last block)
    xpad_ref[...] = jnp.zeros((Hp, Wp, C), jnp.float32)       # tiny; keeps megacore-safe
    xpad_ref[pl.ds(pad, H), pl.ds(sub, W), :] = x             # sublane-aligned interior

    # ---- im2col: one (H*W, K*K*C) matrix in VMEM ----
    for ky in range(K):
        for kx in range(K):
            t = ky * K + kx
            tap = xpad_ref[pl.ds(ky, H), pl.ds(sub - pad + kx, W), :]   # (H, W, C)
            col_ref[:, pl.ds(t * C, C)] = tap.reshape(HW, C)

    # ---- conv as ONE deep MXU matmul (bf16 inputs, f32 accumulation) + bias ----
    z = jnp.dot(col_ref[...].astype(jnp.bfloat16), w_ref[...],
                preferred_element_type=jnp.float32)           # (HW, Cmid)
    z = z + b_ref[...]

    # ---- GroupNorm(groups, C) + SiLU, computed in packed channel space ----
    # Packed channel k maps to post-shuffle channel k // R, so group g owns the
    # contiguous packed range [g*gsz, (g+1)*gsz).  Single-pass stats.
    gsz = (C // groups) * R
    cnt = float(HW * gsz)                                     # == (R*H*W) * (C // groups)
    s1 = jnp.sum(z, axis=0, keepdims=True)                    # (1, Cmid)
    s2 = jnp.sum(z * z, axis=0, keepdims=True)                # (1, Cmid)
    kidx = jax.lax.broadcasted_iota(jnp.int32, (1, Cmid), 1)
    mean_v = jnp.zeros((1, Cmid), jnp.float32)
    inv_v = jnp.zeros((1, Cmid), jnp.float32)
    for g in range(groups):                                   # groups is small & static
        m = jnp.sum(s1[:, g * gsz:(g + 1) * gsz]) / cnt
        ex2 = jnp.sum(s2[:, g * gsz:(g + 1) * gsz]) / cnt
        var = ex2 - m * m                                     # biased var (PyTorch GroupNorm)
        inv = jax.lax.rsqrt(var + eps)
        sel = (kidx >= g * gsz) & (kidx < (g + 1) * gsz)
        mean_v = jnp.where(sel, m, mean_v)
        inv_v = jnp.where(sel, inv, inv_v)
    scale = inv_v * gam_ref[...]
    shift = bet_ref[...] - mean_v * scale
    y = z * scale + shift
    y = y * jax.nn.sigmoid(y)                                 # SiLU (EUP)

    # ---- fused 1x1 readout conv (last block only; last block is never upsampling) ----
    if has_readout:
        y = jnp.dot(y.astype(jnp.bfloat16), rw_ref[...],
                    preferred_element_type=jnp.float32) + rb_ref[...]

    o_ref[...] = y.reshape(1, H, W, o_ref.shape[-1]).astype(o_ref.dtype)


# ----------------------------------------------------------------------------- wrappers

def mgma_convsc_block(x, p, *, K, residual=None, readout=None):
    """Fused MGMAConvSC block: [x (+res)] -> conv+bias -> GN(2) -> SiLU [-> 1x1 readout]
    [-> PixelShuffle(2) done as a cheap wrapper reshape/transpose if upsampling]."""
    B, H, W, C = x.shape
    pad = K // 2
    R = 4 if p["upsampling"] else 1
    Cmid = R * C
    # sampling_generator(N, reverse=True) always ends with False -> readout-fused block
    # is never an upsampling block.
    assert readout is None or R == 1
    Cpix = C if readout is None else readout["w"].shape[-1]
    Cout_packed = Cmid if readout is None else Cpix
    Hp = H + 2 * pad
    Wp = W + _SUBPAD + pad

    # small, wrapper-side param massaging (tiny; done once per call)
    w2d = p["w"].reshape(K * K * C, Cmid).astype(jnp.bfloat16)
    bvec = p["b"].reshape(1, Cmid).astype(jnp.float32)
    gamma = p["gamma"].reshape(1, C).astype(jnp.float32)
    beta = p["beta"].reshape(1, C).astype(jnp.float32)
    if R > 1:
        # packed channel k = c*4 + (2i+j)  ->  gamma_packed[k] = gamma[k // 4]
        gamma = jnp.repeat(gamma, R, axis=1)
        beta = jnp.repeat(beta, R, axis=1)

    in_list = [x]
    in_specs = [pl.BlockSpec((1, H, W, C), lambda b: (b, 0, 0, 0))]
    if residual is not None:
        assert residual.shape == x.shape
        in_list.append(residual)
        in_specs.append(pl.BlockSpec((1, H, W, C), lambda b: (b, 0, 0, 0)))
    in_list += [w2d, bvec, gamma, beta]
    in_specs += [
        pl.BlockSpec((K * K * C, Cmid), lambda b: (0, 0)),
        pl.BlockSpec((1, Cmid), lambda b: (0, 0)),
        pl.BlockSpec((1, Cmid), lambda b: (0, 0)),
        pl.BlockSpec((1, Cmid), lambda b: (0, 0)),
    ]
    if readout is not None:
        rw = readout["w"].reshape(C, Cpix).astype(jnp.bfloat16)
        rb = readout["b"].reshape(1, Cpix).astype(jnp.float32)
        in_list += [rw, rb]
        in_specs += [pl.BlockSpec((C, Cpix), lambda b: (0, 0)),
                     pl.BlockSpec((1, Cpix), lambda b: (0, 0))]

    kern = functools.partial(
        _fused_block_kernel, H=H, W=W, C=C, K=K, pad=pad, sub=_SUBPAD, R=R,
        groups=2, eps=1e-5,
        has_res=residual is not None, has_readout=readout is not None)

    out = pl.pallas_call(
        kern,
        out_shape=jax.ShapeDtypeStruct((B, H, W, Cout_packed), x.dtype),
        grid=(B,),
        in_specs=in_specs,
        out_specs=pl.BlockSpec((1, H, W, Cout_packed), lambda b: (b, 0, 0, 0)),
        scratch_shapes=[
            pltpu.VMEM((Hp, Wp, C), jnp.float32),          # halo-padded image
            pltpu.VMEM((H * W, K * K * C), jnp.float32),   # im2col matrix
        ],
        compiler_params=pltpu.CompilerParams(dimension_semantics=("parallel",)),
    )(*in_list)

    if R == 4:
        # Pure spatial permutation of the already-normalized/activated packed output.
        out = pixel_shuffle_nhwc(out, 2)
    return out


def decoder_forward(hid, enc1, params, spatio_kernel):
    dec = params["dec"]
    x = hid
    for i in range(len(dec) - 1):
        x = mgma_convsc_block(x, dec[i], K=spatio_kernel)
    # last block: fused (hid + enc1) residual, conv, GN, SiLU and the 1x1 readout
    y = mgma_convsc_block(
        x, dec[-1], K=spatio_kernel, residual=enc1,
        readout=dict(w=params["readout_w"], b=params["readout_b"]))
    return y


# ----------------------------------------------------------------------------- params

def init_decoder_params(key, C_hid, C_out, N_S, spatio_kernel):
    samplings = sampling_generator(N_S, reverse=True)
    params = {"dec": []}
    for s in samplings:
        key, k1, k2, k3, k4 = jax.random.split(key, 5)
        c_conv = C_hid * 4 if s else C_hid       # PixelShuffle(2) eats the 4x channels
        fan_in = C_hid * spatio_kernel * spatio_kernel
        w = jax.random.normal(k1, (spatio_kernel, spatio_kernel, C_hid, c_conv),
                              jnp.float32) / jnp.sqrt(float(fan_in))
        b = 0.01 * jax.random.normal(k2, (c_conv,), jnp.float32)
        gamma = 1.0 + 0.05 * jax.random.normal(k3, (C_hid,), jnp.float32)
        beta = 0.05 * jax.random.normal(k4, (C_hid,), jnp.float32)
        params["dec"].append(dict(w=w, b=b, gamma=gamma, beta=beta, upsampling=s))
    key, k1, k2 = jax.random.split(key, 3)
    params["readout_w"] = jax.random.normal(
        k1, (1, 1, C_hid, C_out), jnp.float32) / jnp.sqrt(float(C_hid))
    params["readout_b"] = 0.01 * jax.random.normal(k2, (C_out,), jnp.float32)
    params["samplings"] = samplings
    return params


# ----------------------------------------------------------------------------- reference
# Pure-JAX reference.  Matmul operands are rounded to bf16 (mirroring the kernel's MXU
# precision: bf16 inputs, f32 accumulation); everything else is f32.

def _ref_conv(x, w, b, pad):
    xr = x.astype(jnp.bfloat16).astype(jnp.float32)
    wr = w.astype(jnp.bfloat16).astype(jnp.float32)
    y = jax.lax.conv_general_dilated(
        xr, wr, window_strides=(1, 1), padding=[(pad, pad), (pad, pad)],
        dimension_numbers=("NHWC", "HWIO", "NHWC"),
        precision=jax.lax.Precision.HIGHEST)
    return y + b


def _ref_gn_silu(x, gamma, beta, groups=2, eps=1e-5):
    B, H, W, C = x.shape
    cg = C // groups
    xr = x.reshape(B, H, W, groups, cg)
    mean = xr.mean(axis=(1, 2, 4), keepdims=True)
    var = jnp.square(xr - mean).mean(axis=(1, 2, 4), keepdims=True)
    xn = ((xr - mean) / jnp.sqrt(var + eps)).reshape(B, H, W, C)
    y = xn * gamma + beta
    return y * jax.nn.sigmoid(y)


def _ref_decoder(hid, enc1, params, spatio_kernel):
    pad = spatio_kernel // 2
    dec = params["dec"]

    def block(x, p):
        y = _ref_conv(x, p["w"], p["b"], pad)
        if p["upsampling"]:
            y = pixel_shuffle_nhwc(y, 2)
        return _ref_gn_silu(y, p["gamma"], p["beta"])

    for i in range(len(dec) - 1):
        hid = block(hid, dec[i])
    Y = block(hid + enc1, dec[-1])
    return _ref_conv(Y, params["readout_w"], params["readout_b"], pad=0)


# ----------------------------------------------------------------------------- main

if __name__ == "__main__":
    B, C_hid, C_out = 2, 16, 4
    H = W = 8
    N_S, spatio_kernel = 2, 3

    key = jax.random.PRNGKey(0)
    k_hid, k_enc, k_par = jax.random.split(key, 3)

    params = init_decoder_params(k_par, C_hid, C_out, N_S, spatio_kernel)
    samplings = params["samplings"]
    up_before_last = 2 ** sum(samplings[:-1])   # enc1 matches hid right before dec[-1]

    hid = jax.random.normal(k_hid, (B, H, W, C_hid), jnp.float32)
    enc1 = jax.random.normal(
        k_enc, (B, H * up_before_last, W * up_before_last, C_hid), jnp.float32)

    out = decoder_forward(hid, enc1, params, spatio_kernel)
    out = jax.block_until_ready(out)

    ref = jax.block_until_ready(_ref_decoder(hid, enc1, params, spatio_kernel))
    assert out.shape == ref.shape, (out.shape, ref.shape)
    assert jnp.allclose(out, ref, atol=2e-3, rtol=2e-3), float(jnp.max(jnp.abs(out - ref)))

    print("KERNEL_OK")
</pallas_src>

<mosaic_0001>
module attributes {stable_mosaic.version = 11 : i64} {
  func.func @_fused_block_kernel(%arg0: i32, %arg1: memref<1x8x8x16xf32, #tpu.memory_space<vmem>>, %arg2: memref<144x64xbf16, #tpu.memory_space<vmem>>, %arg3: memref<1x64xf32, #tpu.memory_space<vmem>>, %arg4: memref<1x64xf32, #tpu.memory_space<vmem>>, %arg5: memref<1x64xf32, #tpu.memory_space<vmem>>, %arg6: memref<1x8x8x64xf32, #tpu.memory_space<vmem>>, %arg7: memref<10x17x16xf32, #tpu.memory_space<vmem>>, %arg8: memref<64x144xf32, #tpu.memory_space<vmem>>) attributes {dimension_semantics = [#tpu.dimension_semantics<parallel>], iteration_bounds = array<i64: 2>, scalar_prefetch = 0 : i64, scratch_operands = 2 : i64, tpu.core_type = #tpu.core_type<tc>, window_params = [{transform_indices = @transform_0, window_bounds = array<i64: 1, 8, 8, 16>}, {pipeline_mode = #tpu.pipeline_mode<synchronous>, transform_indices = @transform_1, window_bounds = array<i64: 144, 64>}, {pipeline_mode = #tpu.pipeline_mode<synchronous>, transform_indices = @transform_2, window_bounds = array<i64: 1, 64>}, {pipeline_mode = #tpu.pipeline_mode<synchronous>, transform_indices = @transform_3, window_bounds = array<i64: 1, 64>}, {pipeline_mode = #tpu.pipeline_mode<synchronous>, transform_indices = @transform_4, window_bounds = array<i64: 1, 64>}, {transform_indices = @transform_5, window_bounds = array<i64: 1, 8, 8, 64>}]} {
    %c0 = arith.constant 0 : index
    %c0_0 = arith.constant 0 : index
    %c0_1 = arith.constant 0 : index
    %c0_2 = arith.constant 0 : index
    %0 = vector.load %arg1[%c0, %c0_0, %c0_1, %c0_2] : memref<1x8x8x16xf32, #tpu.memory_space<vmem>>, vector<1x8x8x16xf32>
    %1 = vector.shape_cast %0 : vector<1x8x8x16xf32> to vector<8x8x16xf32>
    %cst = arith.constant 0.000000e+00 : f32
    %2 = vector.broadcast %cst : f32 to vector<10x17x16xf32>
    %c0_3 = arith.constant 0 : index
    %c0_4 = arith.constant 0 : index
    %c0_5 = arith.constant 0 : index
    %3 = vector.load %arg7[%c0_3, %c0_4, %c0_5] : memref<10x17x16xf32, #tpu.memory_space<vmem>>, vector<10x17x16xf32>
    tpu.vector_store %arg7[%c0_3, %c0_4, %c0_5], %2 {strides = array<i32>} : memref<10x17x16xf32, #tpu.memory_space<vmem>>, vector<10x17x16xf32>,
    %c1 = arith.constant 1 : index
    %c8 = arith.constant 8 : index
    %c0_6 = arith.constant 0 : index
    %4 = vector.load %arg7[%c1, %c8, %c0_6] : memref<10x17x16xf32, #tpu.memory_space<vmem>>, vector<8x8x16xf32>
    tpu.vector_store %arg7[%c1, %c8, %c0_6], %1 {strides = array<i32>} : memref<10x17x16xf32, #tpu.memory_space<vmem>>, vector<8x8x16xf32>,
    %c0_7 = arith.constant 0 : index
    %c7 = arith.constant 7 : index
    %c0_8 = arith.constant 0 : index
    %5 = vector.load %arg7[%c0_7, %c7, %c0_8] : memref<10x17x16xf32, #tpu.memory_space<vmem>>, vector<8x8x16xf32>
    %6 = vector.shape_cast %5 : vector<8x8x16xf32> to vector<64x16xf32>
    %c0_9 = arith.constant 0 : index
    %c0_10 = arith.constant 0 : index
    %7 = vector.load %arg8[%c0_9, %c0_10] : memref<64x144xf32, #tpu.memory_space<vmem>>, vector<64x16xf32>
    tpu.vector_store %arg8[%c0_9, %c0_10], %6 {strides = array<i32>} : memref<64x144xf32, #tpu.memory_space<vmem>>, vector<64x16xf32>,
    %c0_11 = arith.constant 0 : index
    %c8_12 = arith.constant 8 : index
    %c0_13 = arith.constant 0 : index
    %8 = vector.load %arg7[%c0_11, %c8_12, %c0_13] : memref<10x17x16xf32, #tpu.memory_space<vmem>>, vector<8x8x16xf32>
    %9 = vector.shape_cast %8 : vector<8x8x16xf32> to vector<64x16xf32>
    %c0_14 = arith.constant 0 : index
    %c16 = arith.constant 16 : index
    %10 = vector.load %arg8[%c0_14, %c16] : memref<64x144xf32, #tpu.memory_space<vmem>>, vector<64x16xf32>
    tpu.vector_store %arg8[%c0_14, %c16], %9 {strides = array<i32>} : memref<64x144xf32, #tpu.memory_space<vmem>>, vector<64x16xf32>,
    %c0_15 = arith.constant 0 : index
    %c9 = arith.constant 9 : index
    %c0_16 = arith.constant 0 : index
    %11 = vector.load %arg7[%c0_15, %c9, %c0_16] : memref<10x17x16xf32, #tpu.memory_space<vmem>>, vector<8x8x16xf32>
    %12 = vector.shape_cast %11 : vector<8x8x16xf32> to vector<64x16xf32>
    %c0_17 = arith.constant 0 : index
    %c32 = arith.constant 32 : index
    %13 = vector.load %arg8[%c0_17, %c32] : memref<64x144xf32, #tpu.memory_space<vmem>>, vector<64x16xf32>
    tpu.vector_store %arg8[%c0_17, %c32], %12 {strides = array<i32>} : memref<64x144xf32, #tpu.memory_space<vmem>>, vector<64x16xf32>,
    %c1_18 = arith.constant 1 : index
    %c7_19 = arith.constant 7 : index
    %c0_20 = arith.constant 0 : index
    %14 = vector.load %arg7[%c1_18, %c7_19, %c0_20] : memref<10x17x16xf32, #tpu.memory_space<vmem>>, vector<8x8x16xf32>
    %15 = vector.shape_cast %14 : vector<8x8x16xf32> to vector<64x16xf32>
    %c0_21 = arith.constant 0 : index
    %c48 = arith.constant 48 : index
    %16 = vector.load %arg8[%c0_21, %c48] : memref<64x144xf32, #tpu.memory_space<vmem>>, vector<64x16xf32>
    tpu.vector_store %arg8[%c0_21, %c48], %15 {strides = array<i32>} : memref<64x144xf32, #tpu.memory_space<vmem>>, vector<64x16xf32>,
    %c1_22 = arith.constant 1 : index
    %c8_23 = arith.constant 8 : index
    %c0_24 = arith.constant 0 : index
    %17 = vector.load %arg7[%c1_22, %c8_23, %c0_24] : memref<10x17x16xf32, #tpu.memory_space<vmem>>, vector<8x8x16xf32>
    %18 = vector.shape_cast %17 : vector<8x8x16xf32> to vector<64x16xf32>
    %c0_25 = arith.constant 0 : index
    %c64 = arith.constant 64 : index
    %19 = vector.load %arg8[%c0_25, %c64] : memref<64x144xf32, #tpu.memory_space<vmem>>, vector<64x16xf32>
    tpu.vector_store %arg8[%c0_25, %c64], %18 {strides = array<i32>} : memref<64x144xf32, #tpu.memory_space<vmem>>, vector<64x16xf32>,
    %c1_26 = arith.constant 1 : index
    %c9_27 = arith.constant 9 : index
    %c0_28 = arith.constant 0 : index
    %20 = vector.load %arg7[%c1_26, %c9_27, %c0_28] : memref<10x17x16xf32, #tpu.memory_space<vmem>>, vector<8x8x16xf32>
    %21 = vector.shape_cast %20 : vector<8x8x16xf32> to vector<64x16xf32>
    %c0_29 = arith.constant 0 : index
    %c80 = arith.constant 80 : index
    %22 = vector.load %arg8[%c0_29, %c80] : memref<64x144xf32, #tpu.memory_space<vmem>>, vector<64x16xf32>
    tpu.vector_store %arg8[%c0_29, %c80], %21 {strides = array<i32>} : memref<64x144xf32, #tpu.memory_space<vmem>>, vector<64x16xf32>,
    %c2 = arith.constant 2 : index
    %c7_30 = arith.constant 7 : index
    %c0_31 = arith.constant 0 : index
    %23 = vector.load %arg7[%c2, %c7_30, %c0_31] : memref<10x17x16xf32, #tpu.memory_space<vmem>>, vector<8x8x16xf32>
    %24 = vector.shape_cast %23 : vector<8x8x16xf32> to vector<64x16xf32>
    %c0_32 = arith.constant 0 : index
    %c96 = arith.constant 96 : index
    %25 = vector.load %arg8[%c0_32, %c96] : memref<64x144xf32, #tpu.memory_space<vmem>>, vector<64x16xf32>
    tpu.vector_store %arg8[%c0_32, %c96], %24 {strides = array<i32>} : memref<64x144xf32, #tpu.memory_space<vmem>>, vector<64x16xf32>,
    %c2_33 = arith.constant 2 : index
    %c8_34 = arith.constant 8 : index
    %c0_35 = arith.constant 0 : index
    %26 = vector.load %arg7[%c2_33, %c8_34, %c0_35] : memref<10x17x16xf32, #tpu.memory_space<vmem>>, vector<8x8x16xf32>
    %27 = vector.shape_cast %26 : vector<8x8x16xf32> to vector<64x16xf32>
    %c0_36 = arith.constant 0 : index
    %c112 = arith.constant 112 : index
    %28 = vector.load %arg8[%c0_36, %c112] : memref<64x144xf32, #tpu.memory_space<vmem>>, vector<64x16xf32>
    tpu.vector_store %arg8[%c0_36, %c112], %27 {strides = array<i32>} : memref<64x144xf32, #tpu.memory_space<vmem>>, vector<64x16xf32>,
    %c2_37 = arith.constant 2 : index
    %c9_38 = arith.constant 9 : index
    %c0_39 = arith.constant 0 : index
    %29 = vector.load %arg7[%c2_37, %c9_38, %c0_39] : memref<10x17x16xf32, #tpu.memory_space<vmem>>, vector<8x8x16xf32>
    %30 = vector.shape_cast %29 : vector<8x8x16xf32> to vector<64x16xf32>
    %c0_40 = arith.constant 0 : index
    %c128 = arith.constant 128 : index
    %31 = vector.load %arg8[%c0_40, %c128] : memref<64x144xf32, #tpu.memory_space<vmem>>, vector<64x16xf32>
    tpu.vector_store %arg8[%c0_40, %c128], %30 {strides = array<i32>} : memref<64x144xf32, #tpu.memory_space<vmem>>, vector<64x16xf32>,
    %c0_41 = arith.constant 0 : index
    %c0_42 = arith.constant 0 : index
    %32 = vector.load %arg8[%c0_41, %c0_42] : memref<64x144xf32, #tpu.memory_space<vmem>>, vector<64x144xf32>
    %33 = arith.truncf %32 : vector<64x144xf32> to vector<64x144xbf16>
    %c0_43 = arith.constant 0 : index
    %c0_44 = arith.constant 0 : index
    %34 = vector.load %arg2[%c0_43, %c0_44] : memref<144x64xbf16, #tpu.memory_space<vmem>>, vector<144x64xbf16>
    %cst_45 = arith.constant dense<0.000000e+00> : vector<64x64xf32>
    %35 = tpu.matmul %33, %34, %cst_45 {dimension_numbers = #tpu.dot_dimension_numbers<[1], [0], [0], [1], [0, 0, 1, 1], [], []>} : vector<64x144xbf16>, vector<144x64xbf16>, vector<64x64xf32> -> vector<64x64xf32>
    %c0_46 = arith.constant 0 : index
    %c0_47 = arith.constant 0 : index
    %36 = vector.load %arg3[%c0_46, %c0_47] : memref<1x64xf32, #tpu.memory_space<vmem>>, vector<1x64xf32>
    %37 = vector.broadcast %36 : vector<1x64xf32> to vector<64x64xf32>
    %38 = arith.addf %35, %37 : vector<64x64xf32>
    %cst_48 = arith.constant dense<0.000000e+00> : vector<64xf32>
    %39 = vector.multi_reduction <add>, %38, %cst_48 [0] : vector<64x64xf32> to vector<64xf32>
    %40 = vector.shape_cast %39 : vector<64xf32> to vector<1x64xf32>
    %41 = arith.mulf %38, %38 : vector<64x64xf32>
    %cst_49 = arith.constant dense<0.000000e+00> : vector<64xf32>
    %42 = vector.multi_reduction <add>, %41, %cst_49 [0] : vector<64x64xf32> to vector<64xf32>
    %43 = vector.shape_cast %42 : vector<64xf32> to vector<1x64xf32>
    %44 = tpu.iota {dimensions = array<i32: 1>} : vector<1x64xi32>
    %cst_50 = arith.constant 0.000000e+00 : f32
    %45 = vector.broadcast %cst_50 : f32 to vector<1x64xf32>
    %cst_51 = arith.constant 0.000000e+00 : f32
    %46 = vector.broadcast %cst_51 : f32 to vector<1x64xf32>
    %47 = vector.extract_strided_slice %40 {offsets = [0, 0], sizes = [1, 32], strides = [1, 1]} : vector<1x64xf32> to vector<1x32xf32>
    %48 = vector.shape_cast %47 : vector<1x32xf32> to vector<1x1x32xf32>
    %cst_52 = arith.constant dense<0.000000e+00> : vector<1xf32>
    %49 = vector.multi_reduction <add>, %48, %cst_52 [1, 2] : vector<1x1x32xf32> to vector<1xf32>
    %50 = vector.shape_cast %49 : vector<1xf32> to vector<1x1x1xf32>
    %51 = vector.extract %50[0, 0, 0] : f32 from vector<1x1x1xf32>
    %cst_53 = arith.constant 2.048000e+03 : f32
    %52 = arith.divf %51, %cst_53 : f32
    %53 = vector.extract_strided_slice %43 {offsets = [0, 0], sizes = [1, 32], strides = [1, 1]} : vector<1x64xf32> to vector<1x32xf32>
    %54 = vector.shape_cast %53 : vector<1x32xf32> to vector<1x1x32xf32>
    %cst_54 = arith.constant dense<0.000000e+00> : vector<1xf32>
    %55 = vector.multi_reduction <add>, %54, %cst_54 [1, 2] : vector<1x1x32xf32> to vector<1xf32>
    %56 = vector.shape_cast %55 : vector<1xf32> to vector<1x1x1xf32>
    %57 = vector.extract %56[0, 0, 0] : f32 from vector<1x1x1xf32>
    %cst_55 = arith.constant 2.048000e+03 : f32
    %58 = arith.divf %57, %cst_55 : f32
    %59 = arith.mulf %52, %52 : f32
    %60 = arith.subf %58, %59 : f32
    %cst_56 = arith.constant 9.99999974E-6 : f32
    %61 = arith.addf %60, %cst_56 : f32
    %62 = math.rsqrt %61 : f32
    %c0_i32 = arith.constant 0 : i32
    %63 = vector.broadcast %c0_i32 : i32 to vector<1x64xi32>
    %64 = arith.cmpi sge, %44, %63 : vector<1x64xi32>
    %c32_i32 = arith.constant 32 : i32
    %65 = vector.broadcast %c32_i32 : i32 to vector<1x64xi32>
    %66 = arith.cmpi slt, %44, %65 : vector<1x64xi32>
    %67 = arith.andi %64, %66 : vector<1x64xi1>
    %68 = vector.broadcast %52 : f32 to vector<1x64xf32>
    %69 = arith.select %67, %68, %45 : vector<1x64xi1>, vector<1x64xf32>
    %70 = vector.broadcast %62 : f32 to vector<1x64xf32>
    %71 = arith.select %67, %70, %46 : vector<1x64xi1>, vector<1x64xf32>
    %72 = vector.extract_strided_slice %40 {offsets = [0, 32], sizes = [1, 32], strides = [1, 1]} : vector<1x64xf32> to vector<1x32xf32>
    %73 = vector.shape_cast %72 : vector<1x32xf32> to vector<1x1x32xf32>
    %cst_57 = arith.constant dense<0.000000e+00> : vector<1xf32>
    %74 = vector.multi_reduction <add>, %73, %cst_57 [1, 2] : vector<1x1x32xf32> to vector<1xf32>
    %75 = vector.shape_cast %74 : vector<1xf32> to vector<1x1x1xf32>
    %76 = vector.extract %75[0, 0, 0] : f32 from vector<1x1x1xf32>
    %cst_58 = arith.constant 2.048000e+03 : f32
    %77 = arith.divf %76, %cst_58 : f32
    %78 = vector.extract_strided_slice %43 {offsets = [0, 32], sizes = [1, 32], strides = [1, 1]} : vector<1x64xf32> to vector<1x32xf32>
    %79 = vector.shape_cast %78 : vector<1x32xf32> to vector<1x1x32xf32>
    %cst_59 = arith.constant dense<0.000000e+00> : vector<1xf32>
    %80 = vector.multi_reduction <add>, %79, %cst_59 [1, 2] : vector<1x1x32xf32> to vector<1xf32>
    %81 = vector.shape_cast %80 : vector<1xf32> to vector<1x1x1xf32>
    %82 = vector.extract %81[0, 0, 0] : f32 from vector<1x1x1xf32>
    %cst_60 = arith.constant 2.048000e+03 : f32
    %83 = arith.divf %82, %cst_60 : f32
    %84 = arith.mulf %77, %77 : f32
    %85 = arith.subf %83, %84 : f32
    %cst_61 = arith.constant 9.99999974E-6 : f32
    %86 = arith.addf %85, %cst_61 : f32
    %87 = math.rsqrt %86 : f32
    %c32_i32_62 = arith.constant 32 : i32
    %88 = vector.broadcast %c32_i32_62 : i32 to vector<1x64xi32>
    %89 = arith.cmpi sge, %44, %88 : vector<1x64xi32>
    %c64_i32 = arith.constant 64 : i32
    %90 = vector.broadcast %c64_i32 : i32 to vector<1x64xi32>
    %91 = arith.cmpi slt, %44, %90 : vector<1x64xi32>
    %92 = arith.andi %89, %91 : vector<1x64xi1>
    %93 = vector.broadcast %77 : f32 to vector<1x64xf32>
    %94 = arith.select %92, %93, %69 : vector<1x64xi1>, vector<1x64xf32>
    %95 = vector.broadcast %87 : f32 to vector<1x64xf32>
    %96 = arith.select %92, %95, %71 : vector<1x64xi1>, vector<1x64xf32>
    %c0_63 = arith.constant 0 : index
    %c0_64 = arith.constant 0 : index
    %97 = vector.load %arg4[%c0_63, %c0_64] : memref<1x64xf32, #tpu.memory_space<vmem>>, vector<1x64xf32>
    %98 = arith.mulf %96, %97 : vector<1x64xf32>
    %c0_65 = arith.constant 0 : index
    %c0_66 = arith.constant 0 : index
    %99 = vector.load %arg5[%c0_65, %c0_66] : memref<1x64xf32, #tpu.memory_space<vmem>>, vector<1x64xf32>
    %100 = arith.mulf %94, %98 : vector<1x64xf32>
    %101 = arith.subf %99, %100 : vector<1x64xf32>
    %102 = vector.broadcast %98 : vector<1x64xf32> to vector<64x64xf32>
    %103 = arith.mulf %38, %102 : vector<64x64xf32>
    %104 = vector.broadcast %101 : vector<1x64xf32> to vector<64x64xf32>
    %105 = arith.addf %103, %104 : vector<64x64xf32>
    %106 = arith.negf %105 : vector<64x64xf32>
    %107 = math.exp %106 : vector<64x64xf32>
    %cst_67 = arith.constant 1.000000e+00 : f32
    %108 = vector.broadcast %cst_67 : f32 to vector<64x64xf32>
    %109 = arith.addf %108, %107 : vector<64x64xf32>
    %110 = arith.divf %108, %109 : vector<64x64xf32>
    %111 = arith.mulf %105, %110 : vector<64x64xf32>
    %112 = vector.shape_cast %111 : vector<64x64xf32> to vector<1x8x8x64xf32>
    %c0_68 = arith.constant 0 : index
    %c0_69 = arith.constant 0 : index
    %c0_70 = arith.constant 0 : index
    %c0_71 = arith.constant 0 : index
    %113 = vector.load %arg6[%c0_68, %c0_69, %c0_70, %c0_71] : memref<1x8x8x64xf32, #tpu.memory_space<vmem>>, vector<1x8x8x64xf32>
    tpu.vector_store %arg6[%c0_68, %c0_69, %c0_70, %c0_71], %112 {strides = array<i32>} : memref<1x8x8x64xf32, #tpu.memory_space<vmem>>, vector<1x8x8x64xf32>,
    return
  }
  func.func @transform_0(%arg0: i32) -> (i32, i32, i32, i32) {
    %c0_i32 = arith.constant 0 : i32
    %c0_i32_0 = arith.constant 0 : i32
    %c0_i32_1 = arith.constant 0 : i32
    %c0_i32_2 = arith.constant 0 : i32
    return %arg0, %c0_i32, %c0_i32_0, %c0_i32_1 : i32, i32, i32, i32
  }
  func.func @transform_1(%arg0: i32) -> (i32, i32) {
    %c0_i32 = arith.constant 0 : i32
    %c0_i32_0 = arith.constant 0 : i32
    %c0_i32_1 = arith.constant 0 : i32
    return %c0_i32, %c0_i32_0 : i32, i32
  }
  func.func @transform_2(%arg0: i32) -> (i32, i32) {
    %c0_i32 = arith.constant 0 : i32
    %c0_i32_0 = arith.constant 0 : i32
    %c0_i32_1 = arith.constant 0 : i32
    return %c0_i32, %c0_i32_0 : i32, i32
  }
  func.func @transform_3(%arg0: i32) -> (i32, i32) {
    %c0_i32 = arith.constant 0 : i32
    %c0_i32_0 = arith.constant 0 : i32
    %c0_i32_1 = arith.constant 0 : i32
    return %c0_i32, %c0_i32_0 : i32, i32
  }
  func.func @transform_4(%arg0: i32) -> (i32, i32) {
    %c0_i32 = arith.constant 0 : i32
    %c0_i32_0 = arith.constant 0 : i32
    %c0_i32_1 = arith.constant 0 : i32
    return %c0_i32, %c0_i32_0 : i32, i32
  }
  func.func @transform_5(%arg0: i32) -> (i32, i32, i32, i32) {
    %c0_i32 = arith.constant 0 : i32
    %c0_i32_0 = arith.constant 0 : i32
    %c0_i32_1 = arith.constant 0 : i32
    %c0_i32_2 = arith.constant 0 : i32
    return %arg0, %c0_i32, %c0_i32_0, %c0_i32_1 : i32, i32, i32, i32
  }
}

</mosaic_0001>

<bundles_post_ra>
// kernel: tpu_custom_call.1
= control target key start
LH: loop header
LB: loop body
LE: loop exit
PB: predicated region body
PF: predicated region fallthrough
CT: control target
= control target key end

     0   :  { %10 = vsyncpa [#allocation5], 0  ;;  %s1907_s0 = inlined_call_operand.vmem [shape: f32[2,8,8,16], index: 0, kind: input, shape index: {}]   ;;  %s1908_s1 = inlined_call_operand.vmem [shape: bf16[144,64], index: 1, kind: input, shape index: {}]   ;;  %s1909_s2 = inlined_call_operand.vmem [shape: f32[1,64], index: 2, kind: input, shape index: {}]   ;;  %s1910_s3 = inlined_call_operand.vmem [shape: f32[1,64], index: 3, kind: input, shape index: {}]   ;;  %s1911_s4 = inlined_call_operand.vmem [shape: f32[1,64], index: 4, kind: input, shape index: {}]   ;;  %s1912_s5 = inlined_call_operand.hbm [shape: f32[2,8,8,64], index: 5, kind: output, shape index: {}]  }
   0x1   :  { %12 = vsyncpa [#allocation5 + $0x1], 0  ;;  %s1407_s18 = smov 0   ;;  %s1409_s19 = smov 0  }
   0x2   :  { %s1411_s20 = smov 0   ;;  %s1413_s21 = smov 0  }
   0x3 LB: > { %s1428_s22 = sadd.s32 4294967295, %s1363_s21   ;;  %s1140_s23 = sadd.s32 4294967294, %s1363_s21   ;;  %s1363_s21 = sphi %s1413_s21, %s1920_s21   ;;  %s1359_s20 = sphi %s1411_s20, %s1919_s20   ;;  %s1355_s19 = sphi %s1409_s19, %s1918_s19   ;;  %s1351_s18 = sphi %s1407_s18, %s1917_s18  }
   0x4   : > { %s1432_s24 = sadd.s32 1, %s1363_s21   ;;  %s135_s25 = sadd.s32 1, %s1359_s20 }
   0x5   : > { %s132_s26 = ssub.s32 %s1363_s21, %s1432_s24  ;;  %p145_p0 = scmp.ne.s32.totalorder %s1359_s20, %s1355_s19 }
   0x6   : > { %p133_p1 = scmp.eq.s32.totalorder %s132_s26, 0  ;;  %p146_p2 = scmp.eq.s32.totalorder %s1428_s22, 1 }
   0x7   : > { %p151_p3 = scmp.ne.s32.totalorder %s1355_s19, %s1351_s18  ;;  %p152_p4 = scmp.eq.s32.totalorder %s1140_s23, 1 }
   0x8   : > { %s1443_s27 = scalar_select %p133_p1, %s1359_s20, %s135_s25  }
   0x9   : > { %p1445_p5 = por %p146_p2, %p145_p0  ;;  %p1449_p6 = por %p152_p4, %p151_p3 }
   0xa   : > { %p1143_p7 = scmp.ge.s32.totalorder %s1363_s21, 1  ;;  %p190_p8 = scmp.lt.s32.totalorder %s1363_s21, 3 }
   0xc   : > { %p191_p9 = pnand %p1143_p7, %p190_p8 }
   0xd   : > { %vm232_vm0 = vcmask (!%p191_p9), 130048   ;;  %vm235_vm1 = vcmask (!%p191_p9), 122880   ;;  %v1365_v0 = vmov (!%p191_p9), 0.0   ;;  %p218_p10 = scmp.lt.s32.totalorder (!%p191_p9), %s1428_s22, 1  ;;  %v1366_v1 = vmov (!%p191_p9), 0   ;;  %v1256_v2 = vld [vmem:[%s1908_s1] sm:$0xff] (!%p191_p9)  }
   0xe   : > { %194 = sbr.rel (%p191_p9) target bundleno = 983 (0x3d7), region = 40  ;;  %234 = vst.msk [vmem:[#allocation2 + $0x8] sm:$0xff] (!%p191_p9), %vm232_vm0, %v1365_v0  ;;  %233 = vst.msk [vmem:[#allocation2] sm:$0xff] (!%p191_p9), %vm232_vm0, %v1365_v0  ;;  %764 = vmatprep.subr.bf16.mxu0 (!%p191_p9), %v1366_v1  ;;  %1176 = vmatprep.subr.bf16.mxu1 (!%p191_p9), %v1366_v1  ;;  %v1257_v3 = vld [vmem:[%s1908_s1 + $0x8] sm:$0xff] (!%p191_p9)   ;;  %v1258_v4 = vld [vmem:[%s1908_s1 + $0x10] sm:$0xff] (!%p191_p9)   ;;  %s1367_s16 = smov (!%p191_p9), 16  }
   0xf   : > { %237 = vst.msk [vmem:[#allocation2 + $0x18] sm:$0xff] (!%p191_p9), %vm232_vm0, %v1365_v0  ;;  %238 = vst.msk [vmem:[#allocation2 + $0x20] sm:$0xff] (!%p191_p9), %vm232_vm0, %v1365_v0  ;;  %765 = vmatpush1.bf16.msra.mxu0 (!%p191_p9), %v1256_v2  ;;  %1185 = vmatpush1.bf16.msra.mxu1 (!%p191_p9), %v1256_v2  ;;  %s1368_s17 = smov (!%p191_p9), 32   ;;  %v1259_v16 = vld [vmem:[%s1908_s1 + $0x18] sm:$0xff] (!%p191_p9)   ;;  %v1260_v17 = vld [vmem:[%s1908_s1 + $0x20] sm:$0xff] (!%p191_p9)   ;;  %s1369_s6 = smov (!%p191_p9), 48  }
  0x10   : > { %240 = vst.msk [vmem:[#allocation2 + $0x30] sm:$0xff] (!%p191_p9), %vm232_vm0, %v1365_v0  ;;  %241 = vst.msk [vmem:[#allocation2 + $0x38] sm:$0xff] (!%p191_p9), %vm232_vm0, %v1365_v0  ;;  %766 = vmatprep.subr.bf16.mxu0 (!%p191_p9), %v1366_v1  ;;  %1177 = vmatprep.subr.bf16.mxu1 (!%p191_p9), %v1366_v1  ;;  %v1261_v35 = vld [vmem:[%s1908_s1 + $0x28] sm:$0xff] (!%p191_p9)   ;;  %s1370_s9 = smov (!%p191_p9), 64   ;;  %v1262_v36 = vld [vmem:[%s1908_s1 + $0x30] sm:$0xff] (!%p191_p9)   ;;  %s1371_s12 = smov (!%p191_p9), 80  }
  0x11   : > { %243 = vst.msk [vmem:[#allocation2 + $0x48] sm:$0xff] (!%p191_p9), %vm232_vm0, %v1365_v0  ;;  %244 = vst.msk [vmem:[#allocation2 + $0x50] sm:$0xff] (!%p191_p9), %vm232_vm0, %v1365_v0  ;;  %v1263_v37 = vld [vmem:[%s1908_s1 + $0x38] sm:$0xff] (!%p191_p9)   ;;  %v1264_v42 = vld [vmem:[%s1908_s1 + $0x40] sm:$0xff] (!%p191_p9)   ;;  %s1373_s26 = smov (!%p191_p9), 112   ;;  %vm329_vm2 = vcmask (!%p191_p9), 261248  }
  0x12   : > { %246 = vst.msk [vmem:[#allocation2 + $0x60] sm:$0xff] (!%p191_p9), %vm232_vm0, %v1365_v0  ;;  %247 = vst.msk [vmem:[#allocation2 + $0x68] sm:$0xff] (!%p191_p9), %vm232_vm0, %v1365_v0  ;;  %vm378_vm3 = vcmask (!%p191_p9), 392448   ;;  %vm427_vm4 = vcmask (!%p191_p9), 523648   ;;  %vm476_vm5 = vcmask (!%p191_p9), 654848   ;;  %vm525_vm6 = vcmask (!%p191_p9), 786048  }
  0x13   : > { %249 = vst.msk [vmem:[#allocation2 + $0x78] sm:$0xff] (!%p191_p9), %vm232_vm0, %v1365_v0  ;;  %250 = vst.msk [vmem:[#allocation2 + $0x80] sm:$0xff] (!%p191_p9), %vm232_vm0, %v1365_v0  ;;  %767 = vmatpush1.bf16.msra.mxu0 (!%p191_p9), %v1257_v3  ;;  %1186 = vmatpush1.bf16.msra.mxu1 (!%p191_p9), %v1257_v3  ;;  %vm575_vm7 = vcmask (!%p191_p9), 917248   ;;  %vm624_vm8 = vcmask (!%p191_p9), 1048448   ;;  %vm829_vm9 = vcmask (!%p191_p9), 523264   ;;  %vm882_vm10 = vcmask (!%p191_p9), 253952  }
  0x14   : > { %252 = vst.msk [vmem:[#allocation2 + $0x90] sm:$0xff] (!%p191_p9), %vm232_vm0, %v1365_v0  ;;  %253 = vst.msk [vmem:[#allocation2 + $0x98] sm:$0xff] (!%p191_p9), %vm232_vm0, %v1365_v0  ;;  %768 = vmatprep.subr.bf16.mxu0 (!%p191_p9), %v1366_v1  ;;  %1178 = vmatprep.subr.bf16.mxu1 (!%p191_p9), %v1366_v1 }
  0x15   : > { %255 = vst.msk [vmem:[#allocation2 + $0xa8] sm:$0xff] %vm232_vm0, %v1365_v0  ;;  %256 = vst.msk [vmem:[#allocation2 + $0xb0] sm:$0xff] %vm232_vm0, %v1365_v0  ;;  %s219_s7 = scalar_select %p218_p10, %s1428_s22, 1  ;;  %v289_v8 = vld [vmem:[#allocation2 + $0x8] sm:$0xff] }
  0x16   : > { %258 = vst.msk [vmem:[#allocation2 + $0xc0] sm:$0xff] %vm232_vm0, %v1365_v0  ;;  %259 = vst.msk [vmem:[#allocation2 + $0xc8] sm:$0xff] %vm232_vm0, %v1365_v0  ;;  %305 = vrot.lane.b32.xlu0 %v289_v8, %s1367_s16  ;;  %v273_v15 = vld [vmem:[#allocation2 + $0x7] sm:$0xff] }
  0x17   : > { %261 = vst.msk [vmem:[#allocation2 + $0xd8] sm:$0xff] %vm232_vm0, %v1365_v0  ;;  %262 = vst.msk [vmem:[#allocation2 + $0xe0] sm:$0xff] %vm232_vm0, %v1365_v0  ;;  %s1174_s10 = sshll.u32 %s219_s7, 6  ;;  %769 = vmatpush1.bf16.msra.mxu0 %v1258_v4  ;;  %1187 = vmatpush1.bf16.msra.mxu1 %v1258_v4 }
  0x18   : > { %236 = vst.msk [vmem:[#allocation2 + $0x10] sm:$0x1] %vm235_vm1, %v1365_v0  ;;  %239 = vst.msk [vmem:[#allocation2 + $0x28] sm:$0x1] %vm235_vm1, %v1365_v0  ;;  %s222_s15 = scalar_lea.vmem %s1907_s0, %s1174_s10  ;;  %770 = vmatprep.subr.bf16.mxu0 %v1366_v1  ;;  %1179 = vmatprep.subr.bf16.mxu1 %v1366_v1 }
  0x19   : > { %242 = vst.msk [vmem:[#allocation2 + $0x40] sm:$0x1] %vm235_vm1, %v1365_v0  ;;  %245 = vst.msk [vmem:[#allocation2 + $0x58] sm:$0x1] %vm235_vm1, %v1365_v0  ;;  %v224_v5 = vld [vmem:[%s222_s15] sm:$0xff]  ;;  %v225_v6 = vld [vmem:[%s222_s15 + $0x8] sm:$0xff] }
  0x1a   : > { %248 = vst.msk [vmem:[#allocation2 + $0x70] sm:$0x1] %vm235_vm1, %v1365_v0  ;;  %251 = vst.msk [vmem:[#allocation2 + $0x88] sm:$0x1] %vm235_vm1, %v1365_v0  ;;  %v226_v7 = vld [vmem:[%s222_s15 + $0x10] sm:$0xff]  ;;  %v228_v10 = vld [vmem:[%s222_s15 + $0x20] sm:$0xff] }
  0x1b   : > { %254 = vst.msk [vmem:[#allocation2 + $0xa0] sm:$0x1] %vm235_vm1, %v1365_v0  ;;  %257 = vst.msk [vmem:[#allocation2 + $0xb8] sm:$0x1] %vm235_vm1, %v1365_v0  ;;  %v227_v11 = vld [vmem:[%s222_s15 + $0x18] sm:$0xff]  ;;  %v229_v12 = vld [vmem:[%s222_s15 + $0x28] sm:$0xff]  ;;  %771 = vmatpush1.bf16.msra.mxu0 %v1259_v16  ;;  %1188 = vmatpush1.bf16.msra.mxu1 %v1259_v16 }
  0x1c   : > { %260 = vst.msk [vmem:[#allocation2 + $0xd0] sm:$0x1] %vm235_vm1, %v1365_v0  ;;  %263 = vst.msk [vmem:[#allocation2 + $0xe8] sm:$0x1] %vm235_vm1, %v1365_v0  ;;  %v230_v13 = vld [vmem:[%s222_s15 + $0x30] sm:$0xff]  ;;  %v231_v14 = vld [vmem:[%s222_s15 + $0x38] sm:$0xff]  ;;  %772 = vmatprep.subr.bf16.mxu0 %v1366_v1  ;;  %1180 = vmatprep.subr.bf16.mxu1 %v1366_v1 }
  0x1d   : > { %265 = vst.msk [vmem:[#allocation2 + $0x20] sm:$0xff] %vm232_vm0, %v224_v5  ;;  %266 = vst.msk [vmem:[#allocation2 + $0x38] sm:$0xff] %vm232_vm0, %v225_v6  ;;  %s1372_s15 = smov 96  }
  0x1e   : > { %267 = vst.msk [vmem:[#allocation2 + $0x50] sm:$0xff] %vm232_vm0, %v226_v7  ;;  %269 = vst.msk [vmem:[#allocation2 + $0x80] sm:$0xff] %vm232_vm0, %v228_v10  ;;  %v542_v53 = vld [vmem:[#allocation2 + $0xdf] sm:$0xff] }
  0x1f   : > { %v338_v9 = vld [vmem:[#allocation2 + $0x9] sm:$0xff]  ;;  %268 = vst.msk [vmem:[#allocation2 + $0x68] sm:$0xff] %vm232_vm0, %v227_v11  ;;  %270 = vst.msk [vmem:[#allocation2 + $0x98] sm:$0xff] %vm232_vm0, %v229_v12  ;;  %773 = vmatpush1.bf16.msra.mxu0 %v1260_v17  ;;  %1189 = vmatpush1.bf16.msra.mxu1 %v1260_v17  ;;  %v591_v54 = vld [vmem:[#allocation2 + $0xe0] sm:$0xff] }
  0x20   : > { %354 = vrot.lane.b32.xlu1 %v338_v9, %s1368_s17  ;;  %271 = vst.msk [vmem:[#allocation2 + $0xb0] sm:$0xff] %vm232_vm0, %v230_v13  ;;  %272 = vst.msk [vmem:[#allocation2 + $0xc8] sm:$0xff] %vm232_vm0, %v231_v14  ;;  %774 = vmatprep.subr.bf16.mxu0 %v1366_v1 }
  0x21   : > { %281 = vst.msk [vmem:[#allocation3] sm:$0xff] %vm232_vm0, %v273_v15  ;;  %1181 = vmatprep.subr.bf16.mxu1 %v1366_v1 }
  0x23   : > { %775 = vmatpush1.bf16.msra.mxu0 %v1261_v35  ;;  %1190 = vmatpush1.bf16.msra.mxu1 %v1261_v35  ;;  %v640_v52 = vld [vmem:[#allocation2 + $0xe1] sm:$0xff] }
  0x24   : > { %v339_v18 = vld [vmem:[#allocation2 + $0x21] sm:$0xff]  ;;  %v1524_v20 = vld [vmem:[#allocation2 + $0x37] sm:$0xff]  ;;  %776 = vmatprep.subr.bf16.mxu0 %v1366_v1  ;;  %1182 = vmatprep.subr.bf16.mxu1 %v1366_v1  ;;  %648 = vst.msk [vmem:[#allocation3 + $0x78] sm:$0xff] %vm232_vm0, %v640_v52 }
  0x25   : > { %v290_v19 = vld [vmem:[#allocation2 + $0x20] sm:$0xff]  ;;  %356 = vrot.lane.b32.xlu1 %v339_v18, %s1368_s17  ;;  %283 = vst.msk [vmem:[#allocation3 + $0x20] sm:$0xff] %vm232_vm0, %v1524_v20  ;;  %v1532_v23 = vld [vmem:[#allocation2 + $0x4f] sm:$0xff]  ;;  %v437_v31 = vld [vmem:[#allocation2 + $0x38] sm:$0xff] }
  0x26   : > { %307 = vrot.lane.b32.xlu0 %v290_v19, %s1367_s16  ;;  %v387_v21 = vld [vmem:[#allocation2 + $0x1f] sm:$0xff]  ;;  %v1539_v24 = vld [vmem:[#allocation2 + $0x51] sm:$0xff]  ;;  %284 = vst.msk [vmem:[#allocation3 + $0x30] sm:$0xff] %vm232_vm0, %v1532_v23  ;;  %v1545_v26 = vld [vmem:[#allocation2 + $0x69] sm:$0xff] }
  0x27   : > { %v1528_v22 = vld [vmem:[#allocation2 + $0x39] sm:$0xff]  ;;  %282 = vst.msk [vmem:[#allocation3 + $0x10] sm:$0xff] %vm232_vm0, %v387_v21  ;;  %v1541_v25 = vld [vmem:[#allocation2 + $0x81] sm:$0xff]  ;;  %642 = vst.msk [vmem:[#allocation3 + $0x18] sm:$0xff] %vm232_vm0, %v1539_v24  ;;  %777 = vmatpush1.bf16.msra.mxu0 %v1262_v36  ;;  %1191 = vmatpush1.bf16.msra.mxu1 %v1262_v36 }
  0x28   : > { %641 = vst.msk [vmem:[#allocation3 + $0x8] sm:$0xff] %vm232_vm0, %v1528_v22  ;;  %v1547_v27 = vld [vmem:[#allocation2 + $0x67] sm:$0xff]  ;;  %v1549_v28 = vld [vmem:[#allocation2 + $0x97] sm:$0xff]  ;;  %644 = vst.msk [vmem:[#allocation3 + $0x38] sm:$0xff] %vm232_vm0, %v1541_v25  ;;  %778 = vmatprep.subr.bf16.mxu0 %v1366_v1  ;;  %1183 = vmatprep.subr.bf16.mxu1 %v1366_v1 }
  0x29   : > { %405 = vrot.lane.b32.xlu1 %v1524_v20, %s1369_s6  ;;  %v1558_v29 = vld [vmem:[#allocation2 + $0x7f] sm:$0xff]  ;;  %285 = vst.msk [vmem:[#allocation3 + $0x40] sm:$0xff] %vm232_vm0, %v1547_v27  ;;  %287 = vst.msk [vmem:[#allocation3 + $0x60] sm:$0xff] %vm232_vm0, %v1549_v28  ;;  %v1568_v32 = vld [vmem:[#allocation2 + $0xaf] sm:$0xff] }
  0x2a   : > { %403 = vrot.lane.b32.xlu0 %v387_v21, %s1369_s6  ;;  %v1560_v30 = vld [vmem:[#allocation2 + $0x99] sm:$0xff]  ;;  %643 = vst.msk [vmem:[#allocation3 + $0x28] sm:$0xff] %vm232_vm0, %v1545_v26  ;;  %v1570_v33 = vld [vmem:[#allocation2 + $0xb1] sm:$0xff]  ;;  %286 = vst.msk [vmem:[#allocation3 + $0x50] sm:$0xff] %vm232_vm0, %v1558_v29 }
  0x2b   : > { %645 = vst.msk [vmem:[#allocation3 + $0x48] sm:$0xff] %vm232_vm0, %v1560_v30  ;;  %v1578_v34 = vld [vmem:[#allocation2 + $0xc9] sm:$0xff]  ;;  %288 = vst.msk [vmem:[#allocation3 + $0x70] sm:$0xff] %vm232_vm0, %v1568_v32  ;;  %779 = vmatpush1.bf16.msra.mxu0 %v1263_v37  ;;  %1192 = vmatpush1.bf16.msra.mxu1 %v1263_v37  ;;  %v294_v43 = vld [vmem:[#allocation2 + $0x80] sm:$0xff] }
  0x2c   : > { %646 = vst.msk [vmem:[#allocation3 + $0x58] sm:$0xff] %vm232_vm0, %v1570_v33  ;;  %647 = vst.msk [vmem:[#allocation3 + $0x68] sm:$0xff] %vm232_vm0, %v1578_v34  ;;  %v585_v41 = vld [vmem:[#allocation2 + $0x50] sm:$0xff]  ;;  %780 = vmatprep.subr.bf16.mxu0 %v1366_v1  ;;  %1184 = vmatprep.subr.bf16.mxu1 %v1366_v1  ;;  %v293_v44 = vld [vmem:[#allocation2 + $0x68] sm:$0xff] }
  0x2d   : > { %454 = vrot.lane.b32.xlu1 %v437_v31, %s1370_s9  ;;  %v441_v45 = vld [vmem:[#allocation2 + $0x98] sm:$0xff]  ;;  %v589_v49 = vld [vmem:[#allocation2 + $0xb0] sm:$0xff]  ;;  %v394_v50 = vld [vmem:[#allocation2 + $0xc7] sm:$0xff] }
  0x2e   : > { %452 = vrot.lane.b32.xlu0 %v290_v19, %s1370_s9  ;;  %v652_v39 = vld [vmem:[#allocation3 + $0x18] sm:$0xff] }
  0x2f   : > { %v650_v38 = vld [vmem:[#allocation3 + $0x8] sm:$0xff]  ;;  %781 = vmatpush1.bf16.msra.mxu0 %v1264_v42  ;;  %1193 = vmatpush1.bf16.msra.mxu1 %v1264_v42  ;;  %v443_v51 = vld [vmem:[#allocation2 + $0xc8] sm:$0xff] }
  0x30   : > { %v666_v40 = vpack.c.bf16 %v652_v39, %v650_v38  ;;  %v656_v8 = vld [vmem:[#allocation3 + $0x38] sm:$0xff] }
  0x31   : > { %503 = vrot.lane.b32.xlu1 %v1528_v22, %s1371_s12  ;;  %v654_v7 = vld [vmem:[#allocation3 + $0x28] sm:$0xff] }
  0x32   : > { %501 = vrot.lane.b32.xlu0 %v339_v18, %s1371_s12  ;;  %1157 = vmatprep.mubr.msk.bf16.mxu0 %vm232_vm0, %v666_v40  ;;  %v658_v46 = vld [vmem:[#allocation3 + $0x48] sm:$0xff]  ;;  %v668_v13 = vpack.c.bf16 %v656_v8, %v654_v7 }
  0x33   : > { %v660_v47 = vld [vmem:[#allocation3 + $0x58] sm:$0xff] }
  0x34   : > { %v670_v48 = vpack.c.bf16 %v660_v47, %v658_v46 }
  0x35   : > { %553 = vrot.lane.b32.xlu1 %v1532_v23, %s1372_s15 }
  0x36   : > { %551 = vrot.lane.b32.xlu0 %v1524_v20, %s1372_s15  ;;  %1159 = vmatprep.mubr.msk.bf16.mxu1 %vm232_vm0, %v670_v48 }
  0x39   : > { %602 = vrot.lane.b32.xlu1 %v585_v41, %s1373_s26 }
  0x3a   : > { %600 = vrot.lane.b32.xlu0 %v437_v31, %s1373_s26 }
  0x3d   : > { %311 = vrot.lane.b32.xlu1 %v585_v41, %s1367_s16 }
  0x3e   : > { %309 = vrot.lane.b32.xlu0 %v437_v31, %s1367_s16 }
  0x41   : > { %315 = vrot.lane.b32.xlu1 %v294_v43, %s1367_s16 }
  0x42   : > { %313 = vrot.lane.b32.xlu0 %v293_v44, %s1367_s16 }
  0x45   : > { %360 = vrot.lane.b32.xlu1 %v1539_v24, %s1368_s17 }
  0x46   : > { %358 = vrot.lane.b32.xlu0 %v1528_v22, %s1368_s17 }
  0x49   : > { %364 = vrot.lane.b32.xlu1 %v1541_v25, %s1368_s17 }
  0x4a   : > { %362 = vrot.lane.b32.xlu0 %v1545_v26, %s1368_s17 }
  0x4d   : > { %409 = vrot.lane.b32.xlu1 %v1547_v27, %s1369_s6 }
  0x4e   : > { %407 = vrot.lane.b32.xlu0 %v1532_v23, %s1369_s6 }
  0x51   : > { %413 = vrot.lane.b32.xlu1 %v1549_v28, %s1369_s6 }
  0x52   : > { %411 = vrot.lane.b32.xlu0 %v1558_v29, %s1369_s6 }
  0x55   : > { %458 = vrot.lane.b32.xlu1 %v293_v44, %s1370_s9 }
  0x56   : > { %456 = vrot.lane.b32.xlu0 %v585_v41, %s1370_s9 }
  0x59   : > { %462 = vrot.lane.b32.xlu1 %v441_v45, %s1370_s9 }
  0x5a   : > { %460 = vrot.lane.b32.xlu0 %v294_v43, %s1370_s9 }
  0x5d   : > { %507 = vrot.lane.b32.xlu1 %v1545_v26, %s1371_s12 }
  0x5e   : > { %505 = vrot.lane.b32.xlu0 %v1539_v24, %s1371_s12 }
  0x61   : > { %511 = vrot.lane.b32.xlu1 %v1560_v30, %s1371_s12 }
  0x62   : > { %509 = vrot.lane.b32.xlu0 %v1541_v25, %s1371_s12 }
  0x65   : > { %557 = vrot.lane.b32.xlu1 %v1558_v29, %s1372_s15 }
  0x66   : > { %555 = vrot.lane.b32.xlu0 %v1547_v27, %s1372_s15 }
  0x69   : > { %561 = vrot.lane.b32.xlu1 %v1568_v32, %s1372_s15 }
  0x6a   : > { %559 = vrot.lane.b32.xlu0 %v1549_v28, %s1372_s15 }
  0x6d   : > { %606 = vrot.lane.b32.xlu1 %v294_v43, %s1373_s26 }
  0x6e   : > { %604 = vrot.lane.b32.xlu0 %v293_v44, %s1373_s26  ;;  %v662_v44 = vld [vmem:[#allocation3 + $0x68] sm:$0xff] }
  0x71   : > { %610 = vrot.lane.b32.xlu1 %v589_v49, %s1373_s26 }
  0x72   : > { %608 = vrot.lane.b32.xlu0 %v441_v45, %s1373_s26 }
  0x75   : > { %319 = vrot.lane.b32.xlu1 %v589_v49, %s1367_s16 }
  0x76   : > { %317 = vrot.lane.b32.xlu0 %v441_v45, %s1367_s16  ;;  %v664_v45 = vld [vmem:[#allocation3 + $0x78] sm:$0xff] }
  0x79   : > { %368 = vrot.lane.b32.xlu1 %v1570_v33, %s1368_s17 }
  0x7a   : > { %366 = vrot.lane.b32.xlu0 %v1560_v30, %s1368_s17 }
  0x7d   : > { %417 = vrot.lane.b32.xlu1 %v394_v50, %s1369_s6 }
  0x7e   : > { %415 = vrot.lane.b32.xlu0 %v1568_v32, %s1369_s6 }
  0x81   : > { %466 = vrot.lane.b32.xlu1 %v443_v51, %s1370_s9 }
  0x82   : > { %464 = vrot.lane.b32.xlu0 %v589_v49, %s1370_s9 }
  0x85   : > { %515 = vrot.lane.b32.xlu1 %v1578_v34, %s1371_s12 }
  0x86   : > { %513 = vrot.lane.b32.xlu0 %v1570_v33, %s1371_s12 }
  0x88   : > { %v306_v55 = vpop.permute.xlu0 %305 }
  0x89   : > { %565 = vrot.lane.b32.xlu1 %v542_v53, %s1372_s15  ;;  %330 = vst.msk [vmem:[#allocation3] sm:$0xff] %vm329_vm2, %v306_v55 }
  0x8a   : > { %563 = vrot.lane.b32.xlu0 %v394_v50, %s1372_s15  ;;  %v672_v50 = vpack.c.bf16 %v664_v45, %v662_v44 }
  0x8d   : > { %614 = vrot.lane.b32.xlu1 %v591_v54, %s1373_s26 }
  0x8e   : > { %612 = vrot.lane.b32.xlu0 %v443_v51, %s1373_s26 }
  0x92   : > { %v355_v56 = vpop.permute.xlu1 %354 }
  0x93   : > { %379 = vst.msk [vmem:[#allocation3] sm:$0xff] %vm378_vm3, %v355_v56 }
  0x97   : > { %v357_v57 = vpop.permute.xlu1 %356 }
  0x98   : > { %v308_v58 = vpop.permute.xlu0 %307 }
  0x99   : > { %331 = vst.msk [vmem:[#allocation3 + $0x10] sm:$0xff] %vm329_vm2, %v308_v58 }
  0x9a   : > { %380 = vst.msk [vmem:[#allocation3 + $0x10] sm:$0xff] %vm378_vm3, %v357_v57 }
  0x9b   : > { %v406_v59 = vpop.permute.xlu1 %405 }
  0x9c   : > { %v404_v60 = vpop.permute.xlu0 %403  ;;  %429 = vst.msk [vmem:[#allocation3 + $0x10] sm:$0xff] %vm427_vm4, %v406_v59 }
  0x9d   : > { %428 = vst.msk [vmem:[#allocation3] sm:$0xff] %vm427_vm4, %v404_v60 }
  0x9f   : > { %v455_v61 = vpop.permute.xlu1 %454 }
  0xa0   : > { %v453_v62 = vpop.permute.xlu0 %452  ;;  %478 = vst.msk [vmem:[#allocation3 + $0x10] sm:$0xff] %vm476_vm5, %v455_v61 }
  0xa1   : > { %477 = vst.msk [vmem:[#allocation3] sm:$0xff] %vm476_vm5, %v453_v62 }
  0xa3   : > { %v504_v63 = vpop.permute.xlu1 %503 }
  0xa4   : > { %v502_v0 = vpop.permute.xlu0 %501  ;;  %527 = vst.msk [vmem:[#allocation3 + $0x10] sm:$0xff] %vm525_vm6, %v504_v63 }
  0xa5   : > { %526 = vst.msk [vmem:[#allocation3] sm:$0xff] %vm525_vm6, %v502_v0 }
  0xa7   : > { %v554_v1 = vpop.permute.xlu1 %553 }
  0xa8   : > { %v552_v2 = vpop.permute.xlu0 %551  ;;  %577 = vst.msk [vmem:[#allocation3 + $0x10] sm:$0xff] %vm575_vm7, %v554_v1 }
  0xa9   : > { %576 = vst.msk [vmem:[#allocation3] sm:$0xff] %vm575_vm7, %v552_v2 }
  0xab   : > { %v603_v3 = vpop.permute.xlu1 %602 }
  0xac   : > { %v601_v4 = vpop.permute.xlu0 %600  ;;  %626 = vst.msk [vmem:[#allocation3 + $0x10] sm:$0xff] %vm624_vm8, %v603_v3 }
  0xad   : > { %625 = vst.msk [vmem:[#allocation3] sm:$0xff] %vm624_vm8, %v601_v4 }
  0xaf   : > { %v312_v5 = vpop.permute.xlu1 %311 }
  0xb0   : > { %v310_v6 = vpop.permute.xlu0 %309  ;;  %333 = vst.msk [vmem:[#allocation3 + $0x30] sm:$0xff] %vm329_vm2, %v312_v5 }
  0xb1   : > { %332 = vst.msk [vmem:[#allocation3 + $0x20] sm:$0xff] %vm329_vm2, %v310_v6 }
  0xb3   : > { %v316_v9 = vpop.permute.xlu1 %315  ;;  %v651_v12 = vld [vmem:[#allocation3 + $0x10] sm:$0xff] }
  0xb4   : > { %v314_v10 = vpop.permute.xlu0 %313  ;;  %v649_v11 = vld [vmem:[#allocation3] sm:$0xff]  ;;  %335 = vst.msk [vmem:[#allocation3 + $0x50] sm:$0xff] %vm329_vm2, %v316_v9 }
  0xb5   : > { %334 = vst.msk [vmem:[#allocation3 + $0x40] sm:$0xff] %vm329_vm2, %v314_v10  ;;  %v665_v14 = vpack.c.bf16 %v651_v12, %v649_v11 }
  0xb7   : > { %797 = vmatmul.mubr.bf16.vlgmr.msra.gmra.mrb[0].mxu0 %v665_v14  ;;  %v361_v15 = vpop.permute.xlu1 %360 }
  0xb8   : > { %v359_v16 = vpop.permute.xlu0 %358  ;;  %1158 = vmatprep.mubr.msk.bf16.mxu0 %vm232_vm0, %v668_v13  ;;  %382 = vst.msk [vmem:[#allocation3 + $0x30] sm:$0xff] %vm378_vm3, %v361_v15  ;;  %v1147_v13 = vld [vmem:[%s1909_s2] ss:$0 sm:$0xff] }
  0xb9   : > { %381 = vst.msk [vmem:[#allocation3 + $0x20] sm:$0xff] %vm378_vm3, %v359_v16 }
  0xbb   : > { %v365_v17 = vpop.permute.xlu1 %364 }
  0xbc   : > { %v363_v18 = vpop.permute.xlu0 %362  ;;  %384 = vst.msk [vmem:[#allocation3 + $0x50] sm:$0xff] %vm378_vm3, %v365_v17 }
  0xbd   : > { %383 = vst.msk [vmem:[#allocation3 + $0x40] sm:$0xff] %vm378_vm3, %v363_v18 }
  0xbf   : > { %v410_v19 = vpop.permute.xlu1 %409 }
  0xc0   : > { %v408_v20 = vpop.permute.xlu0 %407  ;;  %431 = vst.msk [vmem:[#allocation3 + $0x30] sm:$0xff] %vm427_vm4, %v410_v19 }
  0xc1   : > { %430 = vst.msk [vmem:[#allocation3 + $0x20] sm:$0xff] %vm427_vm4, %v408_v20 }
  0xc3   : > { %v414_v21 = vpop.permute.xlu1 %413 }
  0xc4   : > { %v412_v22 = vpop.permute.xlu0 %411  ;;  %433 = vst.msk [vmem:[#allocation3 + $0x50] sm:$0xff] %vm427_vm4, %v414_v21 }
  0xc5   : > { %432 = vst.msk [vmem:[#allocation3 + $0x40] sm:$0xff] %vm427_vm4, %v412_v22 }
  0xc7   : > { %v459_v23 = vpop.permute.xlu1 %458 }
  0xc8   : > { %v457_v24 = vpop.permute.xlu0 %456  ;;  %480 = vst.msk [vmem:[#allocation3 + $0x30] sm:$0xff] %vm476_vm5, %v459_v23 }
  0xc9   : > { %479 = vst.msk [vmem:[#allocation3 + $0x20] sm:$0xff] %vm476_vm5, %v457_v24 }
  0xcb   : > { %v463_v25 = vpop.permute.xlu1 %462 }
  0xcc   : > { %v461_v26 = vpop.permute.xlu0 %460  ;;  %482 = vst.msk [vmem:[#allocation3 + $0x50] sm:$0xff] %vm476_vm5, %v463_v25 }
  0xcd   : > { %481 = vst.msk [vmem:[#allocation3 + $0x40] sm:$0xff] %vm476_vm5, %v461_v26 }
  0xcf   : > { %v508_v27 = vpop.permute.xlu1 %507 }
  0xd0   : > { %v506_v28 = vpop.permute.xlu0 %505  ;;  %529 = vst.msk [vmem:[#allocation3 + $0x30] sm:$0xff] %vm525_vm6, %v508_v27 }
  0xd1   : > { %528 = vst.msk [vmem:[#allocation3 + $0x20] sm:$0xff] %vm525_vm6, %v506_v28 }
  0xd3   : > { %v512_v29 = vpop.permute.xlu1 %511 }
  0xd4   : > { %v510_v30 = vpop.permute.xlu0 %509  ;;  %531 = vst.msk [vmem:[#allocation3 + $0x50] sm:$0xff] %vm525_vm6, %v512_v29 }
  0xd5   : > { %530 = vst.msk [vmem:[#allocation3 + $0x40] sm:$0xff] %vm525_vm6, %v510_v30 }
  0xd7   : > { %v558_v31 = vpop.permute.xlu1 %557 }
  0xd8   : > { %v556_v32 = vpop.permute.xlu0 %555  ;;  %579 = vst.msk [vmem:[#allocation3 + $0x30] sm:$0xff] %vm575_vm7, %v558_v31 }
  0xd9   : > { %578 = vst.msk [vmem:[#allocation3 + $0x20] sm:$0xff] %vm575_vm7, %v556_v32 }
  0xdb   : > { %v562_v33 = vpop.permute.xlu1 %561 }
  0xdc   : > { %v560_v34 = vpop.permute.xlu0 %559  ;;  %581 = vst.msk [vmem:[#allocation3 + $0x50] sm:$0xff] %vm575_vm7, %v562_v33 }
  0xdd   : > { %580 = vst.msk [vmem:[#allocation3 + $0x40] sm:$0xff] %vm575_vm7, %v560_v34 }
  0xdf   : > { %v607_v35 = vpop.permute.xlu1 %606 }
  0xe0   : > { %v605_v36 = vpop.permute.xlu0 %604  ;;  %628 = vst.msk [vmem:[#allocation3 + $0x30] sm:$0xff] %vm624_vm8, %v607_v35 }
  0xe1   : > { %627 = vst.msk [vmem:[#allocation3 + $0x20] sm:$0xff] %vm624_vm8, %v605_v36 }
  0xe3   : > { %v611_v37 = vpop.permute.xlu1 %610 }
  0xe4   : > { %v609_v38 = vpop.permute.xlu0 %608  ;;  %630 = vst.msk [vmem:[#allocation3 + $0x50] sm:$0xff] %vm624_vm8, %v611_v37 }
  0xe5   : > { %629 = vst.msk [vmem:[#allocation3 + $0x40] sm:$0xff] %vm624_vm8, %v609_v38 }
  0xe7   : > { %v320_v39 = vpop.permute.xlu1 %319  ;;  %v655_v42 = vld [vmem:[#allocation3 + $0x30] sm:$0xff] }
  0xe8   : > { %v318_v40 = vpop.permute.xlu0 %317  ;;  %v653_v41 = vld [vmem:[#allocation3 + $0x20] sm:$0xff]  ;;  %337 = vst.msk [vmem:[#allocation3 + $0x70] sm:$0xff] %vm329_vm2, %v320_v39 }
  0xe9   : > { %336 = vst.msk [vmem:[#allocation3 + $0x60] sm:$0xff] %vm329_vm2, %v318_v40  ;;  %v667_v43 = vpack.c.bf16 %v655_v42, %v653_v41 }
  0xeb   : > { %805 = vmatmul.mubr.bf16.gmra.mrb[4].mxu0 %v667_v43  ;;  %v369_v46 = vpop.permute.xlu1 %368  ;;  %v659_v49 = vld [vmem:[#allocation3 + $0x50] sm:$0xff] }
  0xec   : > { %v367_v47 = vpop.permute.xlu0 %366  ;;  %v657_v48 = vld [vmem:[#allocation3 + $0x40] sm:$0xff]  ;;  %386 = vst.msk [vmem:[#allocation3 + $0x70] sm:$0xff] %vm378_vm3, %v369_v46 }
  0xed   : > { %385 = vst.msk [vmem:[#allocation3 + $0x60] sm:$0xff] %vm378_vm3, %v367_v47  ;;  %v669_v51 = vpack.c.bf16 %v659_v49, %v657_v48 }
  0xef   : > { %813 = vmatmul.mubr.bf16.vlgmr.msra.gmra.mrb[0].mxu1 %v669_v51  ;;  %v418_v52 = vpop.permute.xlu1 %417 }
  0xf0   : > { %v416_v53 = vpop.permute.xlu0 %415  ;;  %1160 = vmatprep.mubr.msk.bf16.mxu1 %vm232_vm0, %v672_v50  ;;  %435 = vst.msk [vmem:[#allocation3 + $0x70] sm:$0xff] %vm427_vm4, %v418_v52 }
  0xf1   : > { %434 = vst.msk [vmem:[#allocation3 + $0x60] sm:$0xff] %vm427_vm4, %v416_v53 }
  0xf3   : > { %v467_v54 = vpop.permute.xlu1 %466 }
  0xf4   : > { %v465_v55 = vpop.permute.xlu0 %464  ;;  %484 = vst.msk [vmem:[#allocation3 + $0x70] sm:$0xff] %vm476_vm5, %v467_v54 }
  0xf5   : > { %483 = vst.msk [vmem:[#allocation3 + $0x60] sm:$0xff] %vm476_vm5, %v465_v55 }
  0xf7   : > { %v516_v56 = vpop.permute.xlu1 %515 }
  0xf8   : > { %v514_v57 = vpop.permute.xlu0 %513  ;;  %533 = vst.msk [vmem:[#allocation3 + $0x70] sm:$0xff] %vm525_vm6, %v516_v56 }
  0xf9   : > { %532 = vst.msk [vmem:[#allocation3 + $0x60] sm:$0xff] %vm525_vm6, %v514_v57 }
  0xfb   : > { %v566_v58 = vpop.permute.xlu1 %565 }
  0xfc   : > { %v564_v59 = vpop.permute.xlu0 %563  ;;  %583 = vst.msk [vmem:[#allocation3 + $0x70] sm:$0xff] %vm575_vm7, %v566_v58 }
  0xfd   : > { %582 = vst.msk [vmem:[#allocation3 + $0x60] sm:$0xff] %vm575_vm7, %v564_v59 }
  0xff   : > { %v615_v60 = vpop.permute.xlu1 %614 }
 0x100   : > { %v613_v61 = vpop.permute.xlu0 %612  ;;  %632 = vst.msk [vmem:[#allocation3 + $0x70] sm:$0xff] %vm624_vm8, %v615_v60 }
 0x101   : > { %631 = vst.msk [vmem:[#allocation3 + $0x60] sm:$0xff] %vm624_vm8, %v613_v61 }
 0x107   : > { %v663_v63 = vld [vmem:[#allocation3 + $0x70] sm:$0xff] }
 0x108   : > { %v661_v62 = vld [vmem:[#allocation3 + $0x60] sm:$0xff] }
 0x109   : > { %v671_v0 = vpack.c.bf16 %v663_v63, %v661_v62 }
 0x10b   : > { %821 = vmatmul.mubr.bf16.gmra.mrb[4].mxu1 %v671_v0 }
 0x18a   : > { %v798_v1 = vpop.f32.mrb[0].mxu0 }
 0x18b   : > { %v800_v2 = vpop.f32.mrb[1].mxu0  ;;  %v1744_v15 = vadd.f32 %v1147_v13, %v798_v1 }
 0x18c   : > { %v801_v3 = vpop.f32.mrb[2].mxu0 }
 0x18d   : > { %v803_v4 = vpop.f32.mrb[3].mxu0  ;;  %v1742_v14 = vadd.f32 %v1147_v13, %v801_v3  ;;  %v851_v18 = vmul.f32 %v1744_v15, %v1744_v15  ;;  %v830_v22 = vsel %vm829_vm9, %v1744_v15, 0.0 }
 0x18f   : > { %v852_v17 = vmul.f32 %v1742_v14, %v1742_v14  ;;  %v831_v19 = vsel %vm829_vm9, %v1742_v14, 0.0  ;;  %v859_v26 = vsel %vm829_vm9, %v851_v18, 0.0 }
 0x190   : > { %v832_v25 = vadd.f32 %v831_v19, %v830_v22 }
 0x191   : > { %v860_v23 = vsel %vm829_vm9, %v852_v17, 0.0 }
 0x192   : > { %v861_v30 = vadd.f32 %v860_v23, %v859_v26 }
 0x1be   : > { %v806_v5 = vpop.f32.mrb[4].mxu0 }
 0x1bf   : > { %v808_v6 = vpop.f32.mrb[5].mxu0  ;;  %v1746_v16 = vadd.f32 %v1147_v13, %v806_v5 }
 0x1c0   : > { %v809_v7 = vpop.f32.mrb[6].mxu0 }
 0x1c1   : > { %v811_v8 = vpop.f32.mrb[7].mxu0  ;;  %v853_v20 = vmul.f32 %v1746_v16, %v1746_v16  ;;  %v1756_v21 = vadd.f32 %v1147_v13, %v809_v7  ;;  %v833_v24 = vsel %vm829_vm9, %v1746_v16, 0.0 }
 0x1c2   : > { %v814_v9 = vpop.f32.mrb[0].mxu1  ;;  %v834_v31 = vadd.f32 %v833_v24, %v832_v25 }
 0x1c3   : > { %v816_v10 = vpop.f32.mrb[1].mxu1  ;;  %v862_v27 = vsel %vm829_vm9, %v853_v20, 0.0  ;;  %v854_v28 = vmul.f32 %v1756_v21, %v1756_v21  ;;  %v1767_v29 = vadd.f32 %v1147_v13, %v814_v9  ;;  %v835_v32 = vsel %vm829_vm9, %v1756_v21, 0.0 }
 0x1c4   : > { %v817_v11 = vpop.f32.mrb[2].mxu1  ;;  %v863_v33 = vadd.f32 %v862_v27, %v861_v30  ;;  %v836_v37 = vadd.f32 %v835_v32, %v834_v31 }
 0x1c5   : > { %v819_v12 = vpop.f32.mrb[3].mxu1  ;;  %v864_v34 = vsel %vm829_vm9, %v854_v28, 0.0  ;;  %v855_v35 = vmul.f32 %v1767_v29, %v1767_v29  ;;  %v1774_v36 = vadd.f32 %v1147_v13, %v817_v11  ;;  %v837_v38 = vsel %vm829_vm9, %v1767_v29, 0.0 }
 0x1c6   : > { %v865_v39 = vadd.f32 %v864_v34, %v863_v33  ;;  %v838_v42 = vadd.f32 %v837_v38, %v836_v37 }
 0x1c7   : > { %v866_v40 = vsel %vm829_vm9, %v855_v35, 0.0  ;;  %v856_v41 = vmul.f32 %v1774_v36, %v1774_v36  ;;  %v839_v43 = vsel %vm829_vm9, %v1774_v36, 0.0 }
 0x1c8   : > { %v867_v44 = vadd.f32 %v866_v40, %v865_v39  ;;  %v840_v49 = vadd.f32 %v839_v43, %v838_v42 }
 0x1c9   : > { %v868_v46 = vsel %vm829_vm9, %v856_v41, 0.0 }
 0x1ca   : > { %v869_v55 = vadd.f32 %v868_v46, %v867_v44 }
 0x1de   : > { %v822_v45 = vpop.f32.mrb[4].mxu1 }
 0x1df   : > { %v1784_v47 = vadd.f32 %v1147_v13, %v822_v45  ;;  %v824_v48 = vpop.f32.mrb[5].mxu1 }
 0x1e0   : > { %v825_v50 = vpop.f32.mrb[6].mxu1 }
 0x1e1   : > { %v841_v51 = vsel %vm829_vm9, %v1784_v47, 0.0  ;;  %v857_v52 = vmul.f32 %v1784_v47, %v1784_v47  ;;  %v1790_v53 = vadd.f32 %v1147_v13, %v825_v50  ;;  %v827_v54 = vpop.f32.mrb[7].mxu1 }
 0x1e2   : > { %v842_v56 = vadd.f32 %v841_v51, %v840_v49 }
 0x1e3   : > { %v870_v57 = vsel %vm829_vm9, %v857_v52, 0.0  ;;  %v843_v58 = vsel %vm829_vm9, %v1790_v53, 0.0  ;;  %v858_v59 = vmul.f32 %v1790_v53, %v1790_v53 }
 0x1e4   : > { %v871_v60 = vadd.f32 %v870_v57, %v869_v55  ;;  %v844_v61 = vadd.f32 %v843_v58, %v842_v56  ;;  %v880_v56 = vlaneseq }
 0x1e5   : > { %v872_v62 = vsel %vm829_vm9, %v858_v59, 0.0 }
 0x1e6   : > { %v845_v63 = vrot.slane %v844_v61, 4  ;;  %v873_v0 = vadd.f32 %v872_v62, %v871_v60  ;;  %v881_v57 = vand.u32 127, %v880_v56 }
 0x1e8   : > { %v846_v1 = vadd.f32 %v845_v63, %v844_v61  ;;  %v874_v2 = vrot.slane %v873_v0, 4  ;;  %vm962_vm11 = vcmp.ge.s32.totalorder %v881_v57, 32  ;;  %vm963_vm12 = vcmp.lt.s32.totalorder %v881_v57, 64 }
 0x1e9   : > { %vm916_vm13 = vcmp.lt.s32.totalorder %v881_v57, 32  ;;  %vm1809_vm14 = vmand %vm962_vm11, %vm963_vm12 }
 0x1ea   : > { %v847_v3 = vrot.slane %v846_v1, 2  ;;  %v875_v4 = vadd.f32 %v874_v2, %v873_v0 }
 0x1ec   : > { %v848_v5 = vadd.f32 %v847_v3, %v846_v1  ;;  %v876_v6 = vrot.slane %v875_v4, 2  ;;  %v975_v1 = vshrl.u32 %v880_v56, 7  ;;  %v969_v3 = vld [vmem:[%s1910_s3] sm:$0x1] }
 0x1ee   : > { %v849_v7 = vrot.slane %v848_v5, 1  ;;  %v877_v8 = vadd.f32 %v876_v6, %v875_v4  ;;  %v976_v6 = vsub.s32 0, %v975_v1 }
 0x1f0   : > { %v850_v9 = vadd.f32 %v849_v7, %v848_v5  ;;  %v878_v10 = vrot.slane %v877_v8, 1 }
 0x1f2   : > { %v883_v11 = vsel %vm882_vm10, %v850_v9, 0.0  ;;  %v879_v12 = vadd.f32 %v878_v10, %v877_v8 }
 0x1f3   : > { %884 = vadd.xlane.f32.xlu0 %v883_v11 }
 0x1f4   : > { %v896_v13 = vsel %vm882_vm10, %v879_v12, 0.0 }
 0x1f5   : > { %897 = vadd.xlane.f32.xlu1 %v896_v13 }
 0x206   : > { %940 = vrot.lane.b32.xlu1 %v879_v12, %s1372_s15 }
 0x209   : > { %923 = vrot.lane.b32.xlu0 %v850_v9, %s1372_s15  ;;  %v971_v9 = vld [vmem:[%s1911_s4] sm:$0x1] }
 0x280   : > { %v885_v17 = vpop.xlane.xlu0 %884 }
 0x281   : > { %v886_v18 = vrot.slane %v885_v17, 4 }
 0x282   : > { %v898_v19 = vpop.xlane.xlu1 %897 }
 0x283   : > { %v887_v20 = vadd.f32 %v886_v18, %v885_v17  ;;  %v899_v22 = vrot.slane %v898_v19, 4 }
 0x284   : > { %v924_v23 = vpop.permute.xlu0 %923 }
 0x285   : > { %v888_v24 = vrot.slane %v887_v20, 2  ;;  %v900_v25 = vadd.f32 %v899_v22, %v898_v19  ;;  %v926_v26 = vsel %vm882_vm10, %v924_v23, 0.0 }
 0x286   : > { %v941_v27 = vpop.permute.xlu1 %940  ;;  %927 = vadd.xlane.f32.xlu0 %v926_v26 }
 0x287   : > { %v901_v28 = vrot.slane %v900_v25, 2  ;;  %v943_v30 = vsel %vm882_vm10, %v941_v27, 0.0  ;;  %v889_v31 = vadd.f32 %v888_v24, %v887_v20 }
 0x288   : > { %944 = vadd.xlane.f32.xlu1 %v943_v30 }
 0x289   : > { %v890_v32 = vrot.slane %v889_v31, 1  ;;  %v902_v33 = vadd.f32 %v901_v28, %v900_v25 }
 0x28b   : > { %v891_v34 = vadd.f32 %v890_v32, %v889_v31  ;;  %v903_v35 = vrot.slane %v902_v33, 1 }
 0x28d   : > { %1194 = vpush %v891_v34  ;;  %v904_v37 = vadd.f32 %v903_v35, %v902_v33 }
 0x28f   : > { %1196 = vpush %v904_v37 }
 0x2be   : > { %s1195_s30 = spop %1194 }
 0x2bf   : > { %s1804_s6 = smul.f32 0.00048828125, %s1195_s30 }
 0x2c0   : > { %s1197_s7 = spop %1196 }
 0x2c1   : > { %s909_s8 = smul.f32 %s1804_s6, %s1804_s6  ;;  %v918_v58 = vstv %s1804_s6 }
 0x2c2   : > { %s908_s9 = smul.f32 0.00048828125, %s1197_s7  ;;  %v919_v60 = vsel %vm916_vm13, %v918_v58, 0.0 }
 0x2c4   : > { %s910_s10 = ssub.f32 %s908_s9, %s909_s8  ;;  %s215_s9 = sand.u32 1, %s1355_s19  }
 0x2c6   : > { %s911_s11 = sadd.f32 1e-05, %s910_s10  ;;  %s1144_s10 = sshll.u32 %s215_s9, 6 }
 0x2c8   : > { %v912_v38 = vstv %s911_s11  ;;  %s217_s11 = scalar_lea.vmem [#allocation4], %s1144_s10 }
 0x2c9   : > { %1265 = vrsqrt.f32 %v912_v38 }
 0x2d3   : > { %v1266_v39 = vpop.eup %1265 }
 0x2d4   : > { %1198 = vpush %v1266_v39 }
 0x305   : > { %s1199_s12 = spop %1198 }
 0x306   : > { %v920_v2 = vstv %s1199_s12  ;;  %s1175_s12 = sshll.u32 %s1428_s22, 10 }
 0x307   : > { %v921_v4 = vsel %vm916_vm13, %v920_v2, 0.0  ;;  %s1856_s22 = scalar_lea.hbm %s1912_s5, %s1175_s12 }
 0x313   : > { %v928_v40 = vpop.xlane.xlu0 %927 }
 0x314   : > { %v929_v41 = vrot.slane %v928_v40, 4 }
 0x315   : > { %v945_v42 = vpop.xlane.xlu1 %944 }
 0x316   : > { %v930_v43 = vadd.f32 %v929_v41, %v928_v40  ;;  %v946_v44 = vrot.slane %v945_v42, 4 }
 0x318   : > { %v931_v45 = vrot.slane %v930_v43, 2  ;;  %v947_v46 = vadd.f32 %v946_v44, %v945_v42 }
 0x31a   : > { %v932_v48 = vadd.f32 %v931_v45, %v930_v43  ;;  %v948_v49 = vrot.slane %v947_v46, 2 }
 0x31c   : > { %v949_v50 = vadd.f32 %v948_v49, %v947_v46  ;;  %v933_v51 = vrot.slane %v932_v48, 1 }
 0x31e   : > { %v934_v52 = vadd.f32 %v933_v51, %v932_v48  ;;  %v950_v54 = vrot.slane %v949_v50, 1 }
 0x320   : > { %1200 = vpush %v934_v52  ;;  %v951_v55 = vadd.f32 %v950_v54, %v949_v50 }
 0x322   : > { %1202 = vpush %v951_v55 }
 0x351   : > { %s1201_s13 = spop %1200 }
 0x352   : > { %s938_s14 = smul.f32 0.00048828125, %s1201_s13  ;;  %s1078_s13 = sshll.u32 %s217_s11, 4  ;;  %s1858_s13 = int_to_ptr.vmem [resolvable:$true] %s1078_s13 }
 0x353   : > { %s1203_s15 = spop %1202 }
 0x354   : > { %s956_s23 = smul.f32 %s938_s14, %s938_s14  ;;  %v965_v61 = vstv %s938_s14 }
 0x355   : > { %s955_s25 = smul.f32 0.00048828125, %s1203_s15  ;;  %v966_v62 = vsel %vm1809_vm14, %v965_v61, %v919_v60 }
 0x357   : > { %s957_s26 = ssub.f32 %s955_s25, %s956_s23  ;;  %s1866_s23 = scalar_lea.sflag [#allocation5], %s215_s9 }
 0x358   : > { %s1301_s25 = scalar_lea.vmem %s1858_s13, 1024 }
 0x359   : > { %s958_s16 = sadd.f32 1e-05, %s957_s26  ;;  %p1302_p11 = scmp.ne.s32.totalorder %s1858_s13, %s1301_s25 }
 0x35a   : > { %s1374_s26 = smov [#allocation4]  }
 0x35b   : > { %v959_v63 = vstv %s958_s16  ;;  %p1303_p12 = pnand %p1302_p11, %p1445_p5  ;;  %s1305_s16 = sshll.u32 %s1374_s26, 4  ;;  %s1306_s16 = int_to_ptr.vmem [resolvable:$false] %s1305_s16 }
 0x35c   : > { %1267 = vrsqrt.f32 %v959_v63  ;;  %p1308_p0 = scmp.lt.s32.totalorder %s1858_s13, %s1306_s16 }
 0x35d   : > { %p1304_p13 = pneg %p1303_p12 }
 0x366   : > { %v1268_v0 = vpop.eup %1267 }
 0x367   : > { %1204 = vpush %v1268_v0 }
 0x398   : > { %s1205_s17 = spop %1204 }
 0x399   : > { %v967_v5 = vstv %s1205_s17  ;;  %s1307_s17 = scalar_lea.vmem %s1306_s16, 2048 }
 0x39a   : > { %v968_v7 = vsel %vm1809_vm14, %v967_v5, %v921_v4  ;;  %p1309_p1 = scmp.lt.s32.totalorder %s1307_s17, %s1301_s25 }
 0x39b   : > { %v970_v8 = vmul.f32 %v969_v3, %v968_v7 }
 0x39c   : > { %p1310_p2 = por %p1309_p1, %p1308_p0 }
 0x39d   : > { %v972_v10 = vmul.f32 %v970_v8, %v966_v62  ;;  %v977_v11 = vrot.slane %v970_v8, %v976_v6 }
 0x39e   : > { %p1311_p3 = pnand %p1310_p2, %p1304_p13 }
 0x39f   : > { %v973_v12 = vsub.f32 %v971_v9, %v972_v10  ;;  %v978_v13 = vmul.f32 %v977_v11, %v1744_v15  ;;  %v979_v17 = vmul.f32 %v977_v11, %v1742_v14  ;;  %v980_v18 = vmul.f32 %v977_v11, %v1746_v16 }
 0x3a0   : > { %v981_v19 = vmul.f32 %v977_v11, %v1756_v21  ;;  %v982_v22 = vmul.f32 %v977_v11, %v1767_v29  ;;  %v983_v23 = vmul.f32 %v977_v11, %v1774_v36  ;;  %v984_v24 = vmul.f32 %v977_v11, %v1784_v47 }
 0x3a1   : > { %v990_v20 = vrot.slane %v973_v12, %v976_v6  ;;  %v985_v30 = vmul.f32 %v977_v11, %v1790_v53 }
 0x3a3   : > { %v992_v25 = vadd.f32 %v990_v20, %v978_v13  ;;  %v993_v26 = vadd.f32 %v990_v20, %v979_v17  ;;  %v994_v27 = vadd.f32 %v990_v20, %v980_v18  ;;  %v995_v28 = vadd.f32 %v990_v20, %v981_v19 }
 0x3a4   : > { %v996_v15 = vadd.f32 %v990_v20, %v982_v22  ;;  %v1833_v31 = vadd.f32 %v990_v20, %v983_v23  ;;  %v1835_v14 = vadd.f32 %v990_v20, %v984_v24  ;;  %v1837_v33 = vadd.f32 %v990_v20, %v985_v30 }
 0x3a5   : > { %v1161_v16 = vmul.f32 -1.442695, %v992_v25  ;;  %v1162_v21 = vmul.f32 -1.442695, %v993_v26  ;;  %v1163_v32 = vmul.f32 -1.442695, %v994_v27 }
 0x3a6   : > { %v1164_v29 = vmul.f32 -1.442695, %v995_v28  ;;  %v1165_v36 = vmul.f32 -1.442695, %v996_v15  ;;  %v1166_v47 = vmul.f32 -1.442695, %v1833_v31 }
 0x3a7   : > { %1269 = vpow2.f32 %v1161_v16  ;;  %v1167_v34 = vmul.f32 -1.442695, %v1835_v14  ;;  %v1168_v53 = vmul.f32 -1.442695, %v1837_v33 }
 0x3a8   : > { %1271 = vpow2.f32 %v1162_v21 }
 0x3a9   : > { %1273 = vpow2.f32 %v1163_v32 }
 0x3aa   : > { %1275 = vpow2.f32 %v1164_v29 }
 0x3ab   : > { %1277 = vpow2.f32 %v1165_v36 }
 0x3ac   : > { %1279 = vpow2.f32 %v1166_v47 }
 0x3ad   : > { %1281 = vpow2.f32 %v1167_v34 }
 0x3ae   : > { %1283 = vpow2.f32 %v1168_v53 }
 0x3b1   : > { %v1270_v35 = vpop.eup %1269 }
 0x3b2   : > { %v1272_v37 = vpop.eup %1271  ;;  %v1024_v38 = vadd.f32 1.0, %v1270_v35 }
 0x3b3   : > { %v1274_v39 = vpop.eup %1273  ;;  %v1025_v40 = vadd.f32 1.0, %v1272_v37 }
 0x3b4   : > { %v1276_v41 = vpop.eup %1275  ;;  %v1026_v42 = vadd.f32 1.0, %v1274_v39  ;;  %1285 = vrcp.f32 %v1024_v38 }
 0x3b5   : > { %v1278_v43 = vpop.eup %1277  ;;  %v1027_v44 = vadd.f32 1.0, %v1276_v41  ;;  %1287 = vrcp.f32 %v1025_v40 }
 0x3b6   : > { %v1280_v45 = vpop.eup %1279  ;;  %v1028_v46 = vadd.f32 1.0, %v1278_v43  ;;  %1289 = vrcp.f32 %v1026_v42 }
 0x3b7   : > { %v1282_v48 = vpop.eup %1281  ;;  %v1029_v49 = vadd.f32 1.0, %v1280_v45  ;;  %1291 = vrcp.f32 %v1027_v44 }
 0x3b8   : > { %v1284_v50 = vpop.eup %1283  ;;  %v1030_v51 = vadd.f32 1.0, %v1282_v48  ;;  %1293 = vrcp.f32 %v1028_v46 }
 0x3b9   : > { %v1031_v52 = vadd.f32 1.0, %v1284_v50  ;;  %1295 = vrcp.f32 %v1029_v49 }
 0x3ba   : > { %1297 = vrcp.f32 %v1030_v51 }
 0x3bb   : > { %1299 = vrcp.f32 %v1031_v52 }
 0x3be   : > { %v1286_v54 = vpop.eup %1285 }
 0x3bf   : > { %v1288_v55 = vpop.eup %1287  ;;  %v1048_v56 = vmul.f32 %v1286_v54, %v992_v25 }
 0x3c0   : > { %v1290_v57 = vpop.eup %1289  ;;  %v1049_v58 = vmul.f32 %v1288_v55, %v993_v26 }
 0x3c1   : > { %v1292_v59 = vpop.eup %1291  ;;  %v1050_v60 = vmul.f32 %v1290_v57, %v994_v27  ;;  %1056 = vst.msk [vmem:[%s217_s11] sm:$0xff] %vm829_vm9, %v1048_v56 }
 0x3c2   : > { %v1294_v61 = vpop.eup %1293  ;;  %v1051_v62 = vmul.f32 %v1292_v59, %v995_v28  ;;  %1057 = vst.msk [vmem:[%s217_s11 + $0x8] sm:$0xff] %vm829_vm9, %v1049_v58 }
 0x3c3   : > { %v1296_v63 = vpop.eup %1295  ;;  %v1052_v0 = vmul.f32 %v1294_v61, %v996_v15  ;;  %1058 = vst.msk [vmem:[%s217_s11 + $0x10] sm:$0xff] %vm829_vm9, %v1050_v60 }
 0x3c4   : > { %v1298_v1 = vpop.eup %1297  ;;  %v1053_v2 = vmul.f32 %v1296_v63, %v1833_v31  ;;  %1059 = vst.msk [vmem:[%s217_s11 + $0x18] sm:$0xff] %vm829_vm9, %v1051_v62 }
 0x3c5   : > { %v1300_v3 = vpop.eup %1299  ;;  %v1054_v4 = vmul.f32 %v1298_v1, %v1835_v14  ;;  %1060 = vst.msk [vmem:[%s217_s11 + $0x20] sm:$0xff] %vm829_vm9, %v1052_v0 }
 0x3c6   : > { %v1055_v5 = vmul.f32 %v1300_v3, %v1837_v33  ;;  %1061 = vst.msk [vmem:[%s217_s11 + $0x28] sm:$0xff] %vm829_vm9, %v1053_v2 }
 0x3c7   : > { %1062 = vst.msk [vmem:[%s217_s11 + $0x30] sm:$0xff] %vm829_vm9, %v1054_v4 }
 0x3c8   : > { %1063 = vst.msk [vmem:[%s217_s11 + $0x38] sm:$0xff] %vm829_vm9, %v1055_v5 }
 0x3c9   : > { %1314 = shalt.err (!%p1311_p3)
}
 0x3ca   : > { %s1315_s30 = scalar_lea.hbm %s1856_s22, 1024  ;;  %s1319_s8 = scalar_lea.hbm %s1912_s5, 2048 }
 0x3cb   : > { %p1316_p4 = scmp.ne.s32.totalorder %s1856_s22, %s1315_s30  ;;  %p1320_p9 = scmp.lt.u32.totalorder %s1856_s22, %s1912_s5 }
 0x3cc   : > { %p1321_p10 = scmp.lt.u32.totalorder %s1319_s8, %s1315_s30  ;;  %p1323_p12 = scmp.lt.u32.totalorder %s1315_s30, %s1856_s22 }
 0x3cd   : > { %p1317_p7 = pnand %p1316_p4, %p1445_p5 }
 0x3ce   : > { %p1322_p11 = por %p1321_p10, %p1320_p9 }
 0x3cf   : > { %p1318_p8 = pneg %p1317_p7 }
 0x3d0   : > { %p1324_p13 = por %p1323_p12, %p1322_p11 }
 0x3d2   : > { %p1325_p0 = pnand %p1324_p13, %p1318_p8 }
 0x3d4   : > { %1328 = shalt.err (!%p1325_p0)
}
 0x3d5   : > { %s1375_s11 = smov 128   ;;  %s1376_s12 = smov 8  }
 0x3d6   : > { %1206 = dma.vmem_to_hbm [thread:$0]  (%p1445_p5), %s1858_s13, 1024, %s1856_s22, %s1866_s23, %s1375_s11, %s1375_s11, %s1376_s12  }
 0x3d7 PF: > { %p1212_p1 = scmp.ge.s32.totalorder %s1363_s21, 2  ;;  %s1093_s14 = sand.u32 1, %s1351_s18  }
 0x3d8   : > { %s1094_s15 = scalar_lea.sflag [#allocation5], %s1093_s14 }
 0x3d9   : > { %p1209_p2 = pnand %p1212_p1, %p1449_p6 }
 0x3db   : > { %1346 = dma.done.wait (!%p1209_p2), %s1094_s15, 1024  }
 0x3dc   : > { %1348 = vsyncadd (!%p1209_p2), %s1094_s15, 4294966272  ;;  %p15_p3 = scmp.ge.s32.totalorder %s1432_s24, 4   ;;  %s1917_s18 = smov %s1355_s19 }
 0x3dd   : > { %s1918_s19 = smov %s1359_s20  ;;  %s1919_s20 = smov %s1443_s27 }
 0x3de   : > { %s1920_s21 = smov %s1432_s24  ;;  %17 = sbr.rel (!%p15_p3) target bundleno = 3 (0x3), region = 77 }
 0x3e5   :  { %1099 = vsyncpa [#allocation5], 1 }
 0x3e6   :  { %1101 = vsyncpa [#allocation5 + $0x1], 1 }

</bundles_post_ra>
